<compile_context>
chip_gen: v7x
topology: tpu7x:2x2x1
jax: 0.10.0
libtpu: 0.0.40
codegen_flags: <defaults>
</compile_context>

<pallas_src>
import jax
import jax.numpy as jnp
from jax.experimental import pallas as pl
from jax.experimental.pallas import tpu as pltpu

LANE = 128


def _round_up(n, m):
    return ((n + m - 1) // m) * m


def _vae_kernel(
    x_ref, eps_ref,                # activations: [TB, in_dim] f32, [TB, MS] f32
    w_ih_ref, b_ih_ref,            # encoder: input -> hidden
    w_ms_ref, b_ms_ref,            # encoder: hidden -> (mu | sigma), packed
    w_zh_ref, b_zh_ref,            # decoder: z -> hidden
    w_ho_ref, b_ho_ref,            # decoder: hidden -> output
    xnew_ref, musig_ref,           # outputs: [TB, OUT_P] f32, [TB, MS] f32
):
    ms_width = musig_ref.shape[1]  # packed mu|sigma width (multiple of 128)
    half = ms_width // 2           # sigma offset inside the packed block

    x = x_ref[...].astype(jnp.bfloat16)   # f32->bf16 cast hides under the MXU
    eps = eps_ref[...]                     # f32

    # ---- Encoder: input -> hidden (ReLU) ----
    h = jnp.dot(x, w_ih_ref[...], preferred_element_type=jnp.float32)
    h = jnp.maximum(h + b_ih_ref[...], 0.0)

    # ---- Fused mu|sigma projection: ONE matmul, packed into ms_width lanes ----
    # mu lives in lanes [0, half), sigma in lanes [half, ms_width).
    ms = jnp.dot(h.astype(jnp.bfloat16), w_ms_ref[...],
                 preferred_element_type=jnp.float32)
    ms = ms + b_ms_ref[...]

    # Align sigma onto lanes [0, half) with one XLU lane rotation (free slot).
    sig_rot = pltpu.roll(ms, half, axis=1)

    # ---- Reparameterization trick (f32 elementwise) ----
    # Lanes [0, z_dim): mu + sigma*eps.  All other lanes either stay zero or
    # hit zero-padded rows of w_zh, so they never affect the decoder.
    z = ms + sig_rot * eps

    # ---- Decoder: z -> hidden (ReLU) -> output (sigmoid) ----
    d = jnp.dot(z.astype(jnp.bfloat16), w_zh_ref[...],
                preferred_element_type=jnp.float32)
    d = jnp.maximum(d + b_zh_ref[...], 0.0)

    o = jnp.dot(d.astype(jnp.bfloat16), w_ho_ref[...],
                preferred_element_type=jnp.float32)
    o = jax.nn.sigmoid(o + b_ho_ref[...])         # exp + recip live on the EUP

    xnew_ref[...] = o.astype(xnew_ref.dtype)
    musig_ref[...] = ms.astype(musig_ref.dtype)


def vae_forward(x, eps, pp, dims, *, num_batch_tiles=2, max_tile_b=2048):
    """x: [B, input_dim] f32, eps: [B, >=z_dim] f32 (extra lanes ignored),
    pp: packed/lane-padded params from prepare_params()."""
    input_dim, hidden_dim, z_dim = dims
    B = x.shape[0]
    ms_width = pp["w_ms"].shape[1]
    half = ms_width // 2
    out_p = pp["w_ho"].shape[1]

    # Batch tiling: 2 tiles by default so v7x's two TensorCores both get work
    # via the "parallel" axis; on single-TC v5e/v6e the one extra grid step is
    # ~0.35us.  Cap the tile so large batches stay inside v7x's smaller VMEM.
    tiles = max(1, int(num_batch_tiles))
    tile_b = min(max_tile_b, _round_up(pl.cdiv(B, tiles), 8))
    b_pad = _round_up(B, tile_b)
    grid = (b_pad // tile_b,)

    # eps is consumed at the packed mu|sigma width; pad only if the caller
    # handed the natural [B, z_dim] noise.
    if eps.shape[1] < ms_width:
        eps = jnp.pad(eps, ((0, 0), (0, ms_width - eps.shape[1])))
    if b_pad != B:
        x = jnp.pad(x, ((0, b_pad - B), (0, 0)))
        eps = jnp.pad(eps, ((0, b_pad - B), (0, 0)))

    def act_spec(width):
        return pl.BlockSpec((tile_b, width), lambda i: (i, 0))

    def resident_spec(arr):
        # Weights/biases are tiny and DMA'd once per grid step (block index
        # never changes), so they effectively stay resident in VMEM.
        return pl.BlockSpec(arr.shape, lambda i: (0, 0))

    in_specs = [
        act_spec(x.shape[1]),           # x at its natural feature width
        act_spec(ms_width),             # eps at the packed width
        resident_spec(pp["w_ih"]), resident_spec(pp["b_ih"]),
        resident_spec(pp["w_ms"]), resident_spec(pp["b_ms"]),
        resident_spec(pp["w_zh"]), resident_spec(pp["b_zh"]),
        resident_spec(pp["w_ho"]), resident_spec(pp["b_ho"]),
    ]
    out_specs = (act_spec(out_p), act_spec(ms_width))
    out_shapes = (
        jax.ShapeDtypeStruct((b_pad, out_p), jnp.float32),      # x_new (padded)
        jax.ShapeDtypeStruct((b_pad, ms_width), jnp.float32),   # mu|sigma packed
    )

    xnew_p, musig_p = pl.pallas_call(
        _vae_kernel,
        grid=grid,
        in_specs=in_specs,
        out_specs=out_specs,
        out_shape=out_shapes,
        compiler_params=pltpu.CompilerParams(
            dimension_semantics=("parallel",),   # megacore-shard the batch axis
        ),
    )(
        x, eps,
        pp["w_ih"], pp["b_ih"],
        pp["w_ms"], pp["b_ms"],
        pp["w_zh"], pp["b_zh"],
        pp["w_ho"], pp["b_ho"],
    )

    x_new = xnew_p[:B, :input_dim]
    mu = musig_p[:B, :z_dim]
    sigma = musig_p[:B, half:half + z_dim]
    return x_new, mu, sigma


def init_params(key, input_dim, hidden_dim, z_dim):
    """Deterministic init mimicking nn.Linear (uniform +/- 1/sqrt(fan_in)).
    Weights stored pre-transposed as [in, out]; biases as [1, out]."""
    def linear(k, fan_in, fan_out):
        kw, kb = jax.random.split(k)
        bound = 1.0 / jnp.sqrt(fan_in)
        w = jax.random.uniform(kw, (fan_in, fan_out), jnp.float32, -bound, bound)
        b = jax.random.uniform(kb, (1, fan_out), jnp.float32, -bound, bound)
        return w, b

    keys = jax.random.split(key, 5)
    w_ih, b_ih = linear(keys[0], input_dim, hidden_dim)
    w_mu, b_mu = linear(keys[1], hidden_dim, z_dim)
    w_sg, b_sg = linear(keys[2], hidden_dim, z_dim)
    w_zh, b_zh = linear(keys[3], z_dim, hidden_dim)
    w_ho, b_ho = linear(keys[4], hidden_dim, input_dim)
    return dict(w_ih=w_ih, b_ih=b_ih, w_mu=w_mu, b_mu=b_mu,
                w_sg=w_sg, b_sg=b_sg, w_zh=w_zh, b_zh=b_zh,
                w_ho=w_ho, b_ho=b_ho)


def prepare_params(params, input_dim, hidden_dim, z_dim):
    """Pack / lane-pad parameters for the kernel:
       * mu|sigma fused into ONE round_up(2*z_dim, 128)-lane block
         (mu at lanes [0, half), sigma at [half, 2*half)),
       * all other output feature axes padded to multiples of 128,
       * x's natural input_dim kept as the contraction width of w_ih,
       * matmul weights cast to bf16, biases kept f32."""
    hid_p = _round_up(hidden_dim, LANE)
    out_p = _round_up(input_dim, LANE)
    ms_width = _round_up(2 * z_dim, LANE)
    half = ms_width // 2
    bf = jnp.bfloat16

    def pad2(a, rows, cols, dtype=jnp.float32):
        out = jnp.zeros((rows, cols), jnp.float32)
        return out.at[:a.shape[0], :a.shape[1]].set(a).astype(dtype)

    # Encoder: input -> hidden (natural rows: x is passed unpadded).
    w_ih = pad2(params["w_ih"], input_dim, hid_p, bf)
    b_ih = pad2(params["b_ih"], 1, hid_p)

    # Fused, packed mu|sigma projection.
    w_ms = jnp.zeros((hid_p, ms_width), jnp.float32)
    w_ms = w_ms.at[:hidden_dim, :z_dim].set(params["w_mu"])
    w_ms = w_ms.at[:hidden_dim, half:half + z_dim].set(params["w_sg"])
    b_ms = jnp.zeros((1, ms_width), jnp.float32)
    b_ms = b_ms.at[:, :z_dim].set(params["b_mu"])
    b_ms = b_ms.at[:, half:half + z_dim].set(params["b_sg"])

    # Decoder: rows beyond z_dim are zero so packed-z garbage lanes vanish.
    w_zh = pad2(params["w_zh"], ms_width, hid_p, bf)
    b_zh = pad2(params["b_zh"], 1, hid_p)
    w_ho = pad2(params["w_ho"], hid_p, out_p, bf)
    b_ho = pad2(params["b_ho"], 1, out_p)

    return dict(w_ih=w_ih, b_ih=b_ih,
                w_ms=w_ms.astype(bf), b_ms=b_ms,
                w_zh=w_zh, b_zh=b_zh,
                w_ho=w_ho, b_ho=b_ho)


def _reference_forward(x, eps, params):
    """Pure-JAX reference with the SAME bf16-operand / f32-accumulate scheme."""
    bf = jnp.bfloat16

    def dot(a, w):
        return jnp.dot(a.astype(bf), w.astype(bf),
                       preferred_element_type=jnp.float32)

    h = jnp.maximum(dot(x, params["w_ih"]) + params["b_ih"], 0.0)
    mu = dot(h, params["w_mu"]) + params["b_mu"]
    sigma = dot(h, params["w_sg"]) + params["b_sg"]
    z = mu + sigma * eps
    d = jnp.maximum(dot(z, params["w_zh"]) + params["b_zh"], 0.0)
    x_new = jax.nn.sigmoid(dot(d, params["w_ho"]) + params["b_ho"])
    return x_new, mu, sigma


if __name__ == "__main__":
    input_dim, hidden_dim, z_dim = 32, 32, 16
    batch = 512                      # 2 batch tiles -> both v7x TCs get work

    root = jax.random.PRNGKey(0)
    k_params, k_x, k_eps = jax.random.split(root, 3)

    params = init_params(k_params, input_dim, hidden_dim, z_dim)
    pp = prepare_params(params, input_dim, hidden_dim, z_dim)
    ms_width = pp["w_ms"].shape[1]

    x = jax.random.normal(k_x, (batch, input_dim), jnp.float32)
    # epsilon ~ N(0,1) (torch.randn_like(sigma)), drawn directly at the packed
    # mu|sigma width so the wrapper needs no pad op; only [:, :z_dim] is the
    # semantic reparameterization noise (the rest multiplies zero weight rows).
    eps_full = jax.random.normal(k_eps, (batch, ms_width), jnp.float32)

    x_new, mu, sigma = vae_forward(
        x, eps_full, pp, (input_dim, hidden_dim, z_dim), num_batch_tiles=2)
    jax.block_until_ready((x_new, mu, sigma))

    x_r, mu_r, sg_r = _reference_forward(x, eps_full[:, :z_dim], params)

    assert jnp.allclose(mu, mu_r, atol=2e-3), float(jnp.max(jnp.abs(mu - mu_r)))
    assert jnp.allclose(sigma, sg_r, atol=2e-3), float(jnp.max(jnp.abs(sigma - sg_r)))
    assert jnp.allclose(x_new, x_r, atol=2e-3), float(jnp.max(jnp.abs(x_new - x_r)))

    print("KERNEL_OK")
</pallas_src>

<mosaic_0001>
module attributes {stable_mosaic.version = 11 : i64} {
  func.func @_vae_kernel(%arg0: i32, %arg1: memref<256x32xf32, #tpu.memory_space<vmem>>, %arg2: memref<256x128xf32, #tpu.memory_space<vmem>>, %arg3: memref<32x128xbf16, #tpu.memory_space<vmem>>, %arg4: memref<1x128xf32, #tpu.memory_space<vmem>>, %arg5: memref<128x128xbf16, #tpu.memory_space<vmem>>, %arg6: memref<1x128xf32, #tpu.memory_space<vmem>>, %arg7: memref<128x128xbf16, #tpu.memory_space<vmem>>, %arg8: memref<1x128xf32, #tpu.memory_space<vmem>>, %arg9: memref<128x128xbf16, #tpu.memory_space<vmem>>, %arg10: memref<1x128xf32, #tpu.memory_space<vmem>>, %arg11: memref<256x128xf32, #tpu.memory_space<vmem>>, %arg12: memref<256x128xf32, #tpu.memory_space<vmem>>) attributes {dimension_semantics = [#tpu.dimension_semantics<parallel>], iteration_bounds = array<i64: 2>, scalar_prefetch = 0 : i64, scratch_operands = 0 : i64, tpu.core_type = #tpu.core_type<tc>, window_params = [{transform_indices = @transform_0, window_bounds = array<i64: 256, 32>}, {transform_indices = @transform_1, window_bounds = array<i64: 256, 128>}, {pipeline_mode = #tpu.pipeline_mode<synchronous>, transform_indices = @transform_2, window_bounds = array<i64: 32, 128>}, {pipeline_mode = #tpu.pipeline_mode<synchronous>, transform_indices = @transform_3, window_bounds = array<i64: 1, 128>}, {pipeline_mode = #tpu.pipeline_mode<synchronous>, transform_indices = @transform_4, window_bounds = array<i64: 128, 128>}, {pipeline_mode = #tpu.pipeline_mode<synchronous>, transform_indices = @transform_5, window_bounds = array<i64: 1, 128>}, {pipeline_mode = #tpu.pipeline_mode<synchronous>, transform_indices = @transform_6, window_bounds = array<i64: 128, 128>}, {pipeline_mode = #tpu.pipeline_mode<synchronous>, transform_indices = @transform_7, window_bounds = array<i64: 1, 128>}, {pipeline_mode = #tpu.pipeline_mode<synchronous>, transform_indices = @transform_8, window_bounds = array<i64: 128, 128>}, {pipeline_mode = #tpu.pipeline_mode<synchronous>, transform_indices = @transform_9, window_bounds = array<i64: 1, 128>}, {transform_indices = @transform_10, window_bounds = array<i64: 256, 128>}, {transform_indices = @transform_11, window_bounds = array<i64: 256, 128>}]} {
    %c0 = arith.constant 0 : index
    %c0_0 = arith.constant 0 : index
    %0 = vector.load %arg1[%c0, %c0_0] : memref<256x32xf32, #tpu.memory_space<vmem>>, vector<256x32xf32>
    %1 = arith.truncf %0 : vector<256x32xf32> to vector<256x32xbf16>
    %c0_1 = arith.constant 0 : index
    %c0_2 = arith.constant 0 : index
    %2 = vector.load %arg2[%c0_1, %c0_2] : memref<256x128xf32, #tpu.memory_space<vmem>>, vector<256x128xf32>
    %c0_3 = arith.constant 0 : index
    %c0_4 = arith.constant 0 : index
    %3 = vector.load %arg3[%c0_3, %c0_4] : memref<32x128xbf16, #tpu.memory_space<vmem>>, vector<32x128xbf16>
    %cst = arith.constant dense<0.000000e+00> : vector<256x128xf32>
    %4 = tpu.matmul %1, %3, %cst {dimension_numbers = #tpu.dot_dimension_numbers<[1], [0], [0], [1], [0, 0, 1, 1], [], []>} : vector<256x32xbf16>, vector<32x128xbf16>, vector<256x128xf32> -> vector<256x128xf32>
    %c0_5 = arith.constant 0 : index
    %c0_6 = arith.constant 0 : index
    %5 = vector.load %arg4[%c0_5, %c0_6] : memref<1x128xf32, #tpu.memory_space<vmem>>, vector<1x128xf32>
    %6 = vector.broadcast %5 : vector<1x128xf32> to vector<256x128xf32>
    %7 = arith.addf %4, %6 : vector<256x128xf32>
    %cst_7 = arith.constant 0.000000e+00 : f32
    %8 = vector.broadcast %cst_7 : f32 to vector<256x128xf32>
    %9 = arith.maximumf %7, %8 : vector<256x128xf32>
    %10 = arith.truncf %9 : vector<256x128xf32> to vector<256x128xbf16>
    %c0_8 = arith.constant 0 : index
    %c0_9 = arith.constant 0 : index
    %11 = vector.load %arg5[%c0_8, %c0_9] : memref<128x128xbf16, #tpu.memory_space<vmem>>, vector<128x128xbf16>
    %cst_10 = arith.constant dense<0.000000e+00> : vector<256x128xf32>
    %12 = tpu.matmul %10, %11, %cst_10 {dimension_numbers = #tpu.dot_dimension_numbers<[1], [0], [0], [1], [0, 0, 1, 1], [], []>} : vector<256x128xbf16>, vector<128x128xbf16>, vector<256x128xf32> -> vector<256x128xf32>
    %c0_11 = arith.constant 0 : index
    %c0_12 = arith.constant 0 : index
    %13 = vector.load %arg6[%c0_11, %c0_12] : memref<1x128xf32, #tpu.memory_space<vmem>>, vector<1x128xf32>
    %14 = vector.broadcast %13 : vector<1x128xf32> to vector<256x128xf32>
    %15 = arith.addf %12, %14 : vector<256x128xf32>
    %c64_i32 = arith.constant 64 : i32
    %16 = tpu.dynamic_rotate %15 by %c64_i32 dim 1 : vector<256x128xf32>, i32 -> vector<256x128xf32>
    %17 = arith.mulf %16, %2 : vector<256x128xf32>
    %18 = arith.addf %15, %17 : vector<256x128xf32>
    %19 = arith.truncf %18 : vector<256x128xf32> to vector<256x128xbf16>
    %c0_13 = arith.constant 0 : index
    %c0_14 = arith.constant 0 : index
    %20 = vector.load %arg7[%c0_13, %c0_14] : memref<128x128xbf16, #tpu.memory_space<vmem>>, vector<128x128xbf16>
    %cst_15 = arith.constant dense<0.000000e+00> : vector<256x128xf32>
    %21 = tpu.matmul %19, %20, %cst_15 {dimension_numbers = #tpu.dot_dimension_numbers<[1], [0], [0], [1], [0, 0, 1, 1], [], []>} : vector<256x128xbf16>, vector<128x128xbf16>, vector<256x128xf32> -> vector<256x128xf32>
    %c0_16 = arith.constant 0 : index
    %c0_17 = arith.constant 0 : index
    %22 = vector.load %arg8[%c0_16, %c0_17] : memref<1x128xf32, #tpu.memory_space<vmem>>, vector<1x128xf32>
    %23 = vector.broadcast %22 : vector<1x128xf32> to vector<256x128xf32>
    %24 = arith.addf %21, %23 : vector<256x128xf32>
    %cst_18 = arith.constant 0.000000e+00 : f32
    %25 = vector.broadcast %cst_18 : f32 to vector<256x128xf32>
    %26 = arith.maximumf %24, %25 : vector<256x128xf32>
    %27 = arith.truncf %26 : vector<256x128xf32> to vector<256x128xbf16>
    %c0_19 = arith.constant 0 : index
    %c0_20 = arith.constant 0 : index
    %28 = vector.load %arg9[%c0_19, %c0_20] : memref<128x128xbf16, #tpu.memory_space<vmem>>, vector<128x128xbf16>
    %cst_21 = arith.constant dense<0.000000e+00> : vector<256x128xf32>
    %29 = tpu.matmul %27, %28, %cst_21 {dimension_numbers = #tpu.dot_dimension_numbers<[1], [0], [0], [1], [0, 0, 1, 1], [], []>} : vector<256x128xbf16>, vector<128x128xbf16>, vector<256x128xf32> -> vector<256x128xf32>
    %c0_22 = arith.constant 0 : index
    %c0_23 = arith.constant 0 : index
    %30 = vector.load %arg10[%c0_22, %c0_23] : memref<1x128xf32, #tpu.memory_space<vmem>>, vector<1x128xf32>
    %31 = vector.broadcast %30 : vector<1x128xf32> to vector<256x128xf32>
    %32 = arith.addf %29, %31 : vector<256x128xf32>
    %33 = arith.negf %32 : vector<256x128xf32>
    %34 = math.exp %33 : vector<256x128xf32>
    %cst_24 = arith.constant 1.000000e+00 : f32
    %35 = vector.broadcast %cst_24 : f32 to vector<256x128xf32>
    %36 = arith.addf %35, %34 : vector<256x128xf32>
    %37 = arith.divf %35, %36 : vector<256x128xf32>
    %c0_25 = arith.constant 0 : index
    %c0_26 = arith.constant 0 : index
    %38 = vector.load %arg11[%c0_25, %c0_26] : memref<256x128xf32, #tpu.memory_space<vmem>>, vector<256x128xf32>
    tpu.vector_store %arg11[%c0_25, %c0_26], %37 {strides = array<i32>} : memref<256x128xf32, #tpu.memory_space<vmem>>, vector<256x128xf32>,
    %c0_27 = arith.constant 0 : index
    %c0_28 = arith.constant 0 : index
    %39 = vector.load %arg12[%c0_27, %c0_28] : memref<256x128xf32, #tpu.memory_space<vmem>>, vector<256x128xf32>
    tpu.vector_store %arg12[%c0_27, %c0_28], %15 {strides = array<i32>} : memref<256x128xf32, #tpu.memory_space<vmem>>, vector<256x128xf32>,
    return
  }
  func.func @transform_0(%arg0: i32) -> (i32, i32) {
    %c0_i32 = arith.constant 0 : i32
    %c0_i32_0 = arith.constant 0 : i32
    return %arg0, %c0_i32 : i32, i32
  }
  func.func @transform_1(%arg0: i32) -> (i32, i32) {
    %c0_i32 = arith.constant 0 : i32
    %c0_i32_0 = arith.constant 0 : i32
    return %arg0, %c0_i32 : i32, i32
  }
  func.func @transform_2(%arg0: i32) -> (i32, i32) {
    %c0_i32 = arith.constant 0 : i32
    %c0_i32_0 = arith.constant 0 : i32
    %c0_i32_1 = arith.constant 0 : i32
    return %c0_i32, %c0_i32_0 : i32, i32
  }
  func.func @transform_3(%arg0: i32) -> (i32, i32) {
    %c0_i32 = arith.constant 0 : i32
    %c0_i32_0 = arith.constant 0 : i32
    %c0_i32_1 = arith.constant 0 : i32
    return %c0_i32, %c0_i32_0 : i32, i32
  }
  func.func @transform_4(%arg0: i32) -> (i32, i32) {
    %c0_i32 = arith.constant 0 : i32
    %c0_i32_0 = arith.constant 0 : i32
    %c0_i32_1 = arith.constant 0 : i32
    return %c0_i32, %c0_i32_0 : i32, i32
  }
  func.func @transform_5(%arg0: i32) -> (i32, i32) {
    %c0_i32 = arith.constant 0 : i32
    %c0_i32_0 = arith.constant 0 : i32
    %c0_i32_1 = arith.constant 0 : i32
    return %c0_i32, %c0_i32_0 : i32, i32
  }
  func.func @transform_6(%arg0: i32) -> (i32, i32) {
    %c0_i32 = arith.constant 0 : i32
    %c0_i32_0 = arith.constant 0 : i32
    %c0_i32_1 = arith.constant 0 : i32
    return %c0_i32, %c0_i32_0 : i32, i32
  }
  func.func @transform_7(%arg0: i32) -> (i32, i32) {
    %c0_i32 = arith.constant 0 : i32
    %c0_i32_0 = arith.constant 0 : i32
    %c0_i32_1 = arith.constant 0 : i32
    return %c0_i32, %c0_i32_0 : i32, i32
  }
  func.func @transform_8(%arg0: i32) -> (i32, i32) {
    %c0_i32 = arith.constant 0 : i32
    %c0_i32_0 = arith.constant 0 : i32
    %c0_i32_1 = arith.constant 0 : i32
    return %c0_i32, %c0_i32_0 : i32, i32
  }
  func.func @transform_9(%arg0: i32) -> (i32, i32) {
    %c0_i32 = arith.constant 0 : i32
    %c0_i32_0 = arith.constant 0 : i32
    %c0_i32_1 = arith.constant 0 : i32
    return %c0_i32, %c0_i32_0 : i32, i32
  }
  func.func @transform_10(%arg0: i32) -> (i32, i32) {
    %c0_i32 = arith.constant 0 : i32
    %c0_i32_0 = arith.constant 0 : i32
    return %arg0, %c0_i32 : i32, i32
  }
  func.func @transform_11(%arg0: i32) -> (i32, i32) {
    %c0_i32 = arith.constant 0 : i32
    %c0_i32_0 = arith.constant 0 : i32
    return %arg0, %c0_i32 : i32, i32
  }
}

</mosaic_0001>

<bundles_post_ra>
// kernel: tpu_custom_call.1
= control target key start
LH: loop header
LB: loop body
LE: loop exit
PB: predicated region body
PF: predicated region fallthrough
CT: control target
= control target key end

     0   :  { %17 = vsyncpa [#allocation3], 0  ;;  %s3766_s0 = inlined_call_operand.vmem [shape: f32[512,32], index: 0, kind: input, shape index: {}]   ;;  %s3767_s1 = inlined_call_operand.vmem [shape: f32[512,128], index: 1, kind: input, shape index: {}]   ;;  %s3768_s2 = inlined_call_operand.hbm [shape: bf16[32,128], index: 2, kind: input, shape index: {}]   ;;  %s3769_s3 = inlined_call_operand.vmem [shape: f32[1,128], index: 3, kind: input, shape index: {}]   ;;  %s3770_s4 = inlined_call_operand.vmem [shape: bf16[128,128], index: 4, kind: input, shape index: {}]   ;;  %s3771_s5 = inlined_call_operand.vmem [shape: f32[1,128], index: 5, kind: input, shape index: {}]   ;;  %s3772_s6 = inlined_call_operand.vmem [shape: bf16[128,128], index: 6, kind: input, shape index: {}]   ;;  %s3773_s7 = inlined_call_operand.vmem [shape: f32[1,128], index: 7, kind: input, shape index: {}]   ;;  %s3774_s8 = inlined_call_operand.hbm [shape: bf16[128,128], index: 8, kind: input, shape index: {}]   ;;  %s3775_s9 = inlined_call_operand.vmem [shape: f32[1,128], index: 9, kind: input, shape index: {}]   ;;  %s3776_s10 = inlined_call_operand.hbm [shape: f32[512,128], index: 10, kind: output, shape index: {0}]   ;;  %s3777_s11 = inlined_call_operand.hbm [shape: f32[512,128], index: 11, kind: output, shape index: {1}]  }
   0x1   :  { %18 = vsyncpa [#allocation6], 0 }
   0x2   :  { %19 = vsyncpa [#allocation4], 0 }
   0x3   :  { %21 = vsyncpa [#allocation4 + $0x1], 0 }
   0x4   :  { %22 = vsyncpa [#allocation9], 0 }
   0x5   :  { %24 = vsyncpa [#allocation9 + $0x1], 0  ;;  %s2962_s17 = smov 0   ;;  %s2964_s18 = smov 0  }
   0x6   :  { %s2966_s19 = smov 0   ;;  %s2968_s20 = smov 0  }
   0x7 LB: > { %3786 = sst [smem:[#allocation14_spill]] %s2879_s17  ;;  %s2983_s21 = sadd.s32 4294967295, %s2891_s20   ;;  %s2891_s20 = sphi %s2968_s20, %s3804_s20   ;;  %s2887_s19 = sphi %s2966_s19, %s3806_s19   ;;  %s2883_s18 = sphi %s2964_s18, %s3808_s18   ;;  %s2879_s17 = sphi %s2962_s17, %s3807_s17  }
   0x8   : > { %3787 = sst [smem:[#allocation15_spill]] %s2887_s19  ;;  %s2121_s22 = sadd.s32 4294967294, %s2891_s20  }
   0x9   : > { %s2987_s23 = sadd.s32 1, %s2891_s20   ;;  %s257_s24 = sadd.s32 1, %s2887_s19 }
   0xa   : > { %3788 = sst [smem:[#allocation16_spill]] %s2987_s23  ;;  %s254_s25 = ssub.s32 %s2891_s20, %s2987_s23 }
   0xb   : > { %p267_p0 = scmp.ne.s32.totalorder %s2887_s19, %s2883_s18  ;;  %p255_p1 = scmp.eq.s32.totalorder %s254_s25, 0 }
   0xc   : > { %p268_p2 = scmp.eq.s32.totalorder %s2983_s21, 1  ;;  %p273_p3 = scmp.ne.s32.totalorder %s2883_s18, %s2879_s17 }
   0xd   : > { %p274_p4 = scmp.eq.s32.totalorder %s2121_s22, 1  ;;  %p2122_p7 = scmp.ge.s32.totalorder %s2891_s20, 1 }
   0xe   : > { %s2998_s26 = scalar_select %p255_p1, %s2887_s19, %s257_s24  }
   0xf   : > { %p3000_p5 = por %p268_p2, %p267_p0  ;;  %p3004_p6 = por %p274_p4, %p273_p3 }
  0x10   : > { %3789 = sst [smem:[#allocation17_spill]] %s2998_s26  ;;  %p307_p8 = scmp.lt.s32.totalorder %s2891_s20, 3 }
  0x11   : > { %s3790_s27 = scalar_select %p3000_p5, 1, 0 }
  0x12   : > { %s3791_s28 = scalar_select %p3004_p6, 1, 0 }
  0x13   : > { %p3779_p9 = scmp.eq.s32.totalorder %s2983_s21, 0  ;;  %p3011_p10 = pnand %p2122_p7, %p307_p8 }
  0x14   : > { %3792 = sst [smem:[#allocation18_spill]] %s3791_s28  ;;  %s2893_s30 = smov [#allocation2]  }
  0x15   : > { %s3793_s29 = scalar_select %p3011_p10, 1, 0 }
  0x16   : > { %s319_s12 = sshll.u32 %s2893_s30, 4  ;;  %p2521_p11 = pneg %p3011_p10  ;;  %s320_s12 = int_to_ptr.vmem [resolvable:$true] %s319_s12 }
  0x17   : > { %s2894_s14 = smov [#allocation5]   ;;  %s2733_s24 = scalar_lea.hbm %s3768_s2, 256 }
  0x18   : > { %p3019_p12 = pnand %p3779_p9, %p2521_p11  ;;  %s347_s15 = sshll.u32 %s2894_s14, 4  ;;  %s3023_s15 = int_to_ptr.vmem [resolvable:$true] %s347_s15 }
  0x19   : > { %p2734_p13 = scmp.ne.s32.totalorder %s3768_s2, %s2733_s24  ;;  %p2740_p3 = scmp.lt.u32.totalorder %s2733_s24, %s3768_s2 }
  0x1a   : > { %p2735_p0 = pneg %p3019_p12 }
  0x1c   : > { %p2736_p1 = pnand %p2735_p0, %p2734_p13 }
  0x1e   : > { %p2737_p2 = pneg %p2736_p1 }
  0x20   : > { %p2742_p4 = pnand %p2740_p3, %p2737_p2 }
  0x22   : > { %2745 = shalt.err (!%p2742_p4)
}
  0x23   : > { %s2746_s14 = scalar_lea.vmem %s320_s12, 256  ;;  %p2754_p9 = scmp.lt.s32.totalorder %s320_s12, %s320_s12 }
  0x24   : > { %p2747_p7 = scmp.ne.s32.totalorder %s320_s12, %s2746_s14  ;;  %p2755_p6 = scmp.lt.s32.totalorder %s2746_s14, %s2746_s14 }
  0x26   : > { %p2749_p8 = pnand %p2747_p7, %p2735_p0  ;;  %p2756_p5 = por %p2755_p6, %p2754_p9 }
  0x28   : > { %p2750_p11 = pneg %p2749_p8 }
  0x2a   : > { %p2757_p10 = pnand %p2756_p5, %p2750_p11 }
  0x2c   : > { %2760 = shalt.err (!%p2757_p10)
}
  0x2d   : > { %s2895_s16 = smov 64   ;;  %s2896_s22 = smov 4  }
  0x2e   : > { %2524 = dma.hbm_to_vmem [thread:$0]  (!%p3019_p12), %s3768_s2, 256, %s320_s12, [#allocation3], %s2895_s16, %s2895_s16, %s2896_s22  }
  0x2f   : > { %s2761_s30 = scalar_lea.hbm %s3774_s8, 1024 }
  0x30   : > { %p2762_p13 = scmp.ne.s32.totalorder %s3774_s8, %s2761_s30  ;;  %p2768_p9 = scmp.lt.u32.totalorder %s2761_s30, %s3774_s8 }
  0x32   : > { %p2764_p5 = pnand %p2762_p13, %p2735_p0 }
  0x34   : > { %p2765_p6 = pneg %p2764_p5 }
  0x36   : > { %p2770_p10 = pnand %p2768_p9, %p2765_p6 }
  0x38   : > { %2773 = shalt.err (!%p2770_p10)
}
  0x39   : > { %s2774_s12 = scalar_lea.vmem %s3023_s15, 1024  ;;  %p2782_p4 = scmp.lt.s32.totalorder %s3023_s15, %s3023_s15 }
  0x3a   : > { %p2775_p1 = scmp.ne.s32.totalorder %s3023_s15, %s2774_s12  ;;  %p2783_p7 = scmp.lt.s32.totalorder %s2774_s12, %s2774_s12 }
  0x3c   : > { %p2777_p2 = pnand %p2775_p1, %p2735_p0  ;;  %p2784_p8 = por %p2783_p7, %p2782_p4 }
  0x3e   : > { %p2778_p3 = pneg %p2777_p2 }
  0x40   : > { %p2785_p11 = pnand %p2784_p8, %p2778_p3 }
  0x42   : > { %2788 = shalt.err (!%p2785_p11)
}
  0x43   : > { %2527 = dma.hbm_to_vmem [thread:$0]  (!%p3019_p12), %s3774_s8, 1024, %s3023_s15, [#allocation6], %s2895_s16, %s2895_s16, %s2896_s22  }
  0x44   : > { %p3795_p13 = scmp.ne.s32.totalorder %s3793_s29, 0 }
  0x45   : > { %p3796_p5 = scmp.eq.s32.totalorder (!%p3795_p13), %s2983_s21, 0 }
  0x46   : > { %384 = sbr.rel (%p3795_p13) target bundleno = 1194 (0x4aa), region = 60 }
  0x4d   : > { %2862 = dma.done.wait (%p3796_p5), [#allocation3], 256   ;;  %p3797_p0 = pmov %p3796_p5 }
  0x4f   : > { %2864 = vsyncadd (%p3797_p0), [#allocation3], 4294967040  ;;  %p3798_p6 = pmov %p3797_p0 }
  0x50   : > { %p3799_p9 = pmov %p3797_p0 }
  0x51   : > { %2866 = dma.done.wait (%p3798_p6), [#allocation6], 1024  }
  0x52   : > { %2868 = vsyncadd (%p3799_p9), [#allocation6], 4294966272  ;;  %s2131_s28 = sshll.u32 %s2983_s21, 5  ;;  %v2579_v0 = vld [vmem:[#allocation2] sm:$0xff]   ;;  %v2580_v1 = vld [vmem:[#allocation2 + $0x8] sm:$0xff]   ;;  %vm556_vm0 = vcmask 261120  }
  0x53   : > { %p439_p10 = scmp.lt.s32.totalorder %s2131_s28, 63  ;;  %2313 = vmatprep.subr.bf16.mxu0 %v2579_v0  ;;  %v2581_v15 = vld [vmem:[%s3770_s4] sm:$0xff]   ;;  %v2582_v17 = vld [vmem:[%s3770_s4 + $0x8] sm:$0xff]   ;;  %v2583_v21 = vld [vmem:[%s3770_s4 + $0x10] sm:$0xff]   ;;  %s3224_s14 = sand.u32 1, %s2883_s18  }
  0x54   : > { %2314 = vmatpush3.bf16.msra.mxu0 %v2579_v0  ;;  %2349 = vmatprep.subr.bf16.mxu1 %v2581_v15  ;;  %v2584_v24 = vld [vmem:[%s3770_s4 + $0x18] sm:$0xff]   ;;  %v2585_v27 = vld [vmem:[%s3770_s4 + $0x20] sm:$0xff]   ;;  %v2586_v32 = vld [vmem:[%s3770_s4 + $0x28] sm:$0xff]   ;;  %s2129_s23 = sshll.u32 %s3224_s14, 8  ;;  %s2897_s19 = smov 64  }
  0x55   : > { %s3810_s28 = smov (!%p439_p10, %s2131_s28), 63  ;;  %2315 = vmatprep.subr.bf16.mxu0 %v2580_v1  ;;  %2350 = vmatpush3.bf16.msra.mxu1 %v2581_v15  ;;  %v2587_v56 = vld [vmem:[%s3770_s4 + $0x30] sm:$0xff]   ;;  %v2588_v57 = vld [vmem:[%s3770_s4 + $0x38] sm:$0xff]   ;;  %v3168_v58 = vld [vmem:[%s3769_s3] ss:$0 sm:$0xff]  ;;  %s3243_s22 = scalar_lea.vmem [#allocation8], %s2129_s23 }
  0x56   : > { %s2132_s29 = sshll.u32 %s3810_s28, 3  ;;  %2351 = vmatprep.subr.bf16.mxu1 %v2582_v17  ;;  %s2221_s30 = sshll.u32 %s2983_s21, 12 }
  0x57   : > { %s3091_s16 = scalar_lea.vmem %s3766_s0, %s2132_s29  ;;  %s3488_s25 = scalar_lea.vmem %s3767_s1, %s2132_s29 }
  0x58   : > { %v453_v2 = vld [vmem:[%s3091_s16] sm:$0xff]  ;;  %v454_v3 = vld [vmem:[%s3091_s16 + $0x8] sm:$0xff]  ;;  %v455_v5 = vld [vmem:[%s3091_s16 + $0x10] sm:$0xff]  ;;  %2316 = vmatpush3.bf16.msra.mxu0 %v2580_v1  ;;  %s3607_s17 = scalar_lea.hbm %s3777_s11, %s2221_s30  ;;  %s1993_s13 = sshll.u32 %s3243_s22, 4  ;;  %s3610_s13 = int_to_ptr.vmem [resolvable:$true] %s1993_s13 }
  0x59   : > { %v485_v4 = vpack.c.bf16 %v454_v3, %v453_v2  ;;  %v456_v6 = vld [vmem:[%s3091_s16 + $0x18] sm:$0xff]  ;;  %v457_v7 = vld [vmem:[%s3091_s16 + $0x20] sm:$0xff]  ;;  %v458_v8 = vld [vmem:[%s3091_s16 + $0x28] sm:$0xff]  ;;  %2352 = vmatpush3.bf16.msra.mxu1 %v2582_v17  ;;  %s1964_s15 = scalar_lea.sflag [#allocation9], %s3224_s14  ;;  %p3800_p1 = scmp.ne.s32.totalorder %s3790_s27, 0 }
  0x5a   : > { %v486_v9 = vpack.c.bf16 %v456_v6, %v455_v5  ;;  %v487_v10 = vpack.c.bf16 %v458_v8, %v457_v7  ;;  %v459_v11 = vld [vmem:[%s3091_s16 + $0x30] sm:$0xff]  ;;  %v460_v12 = vld [vmem:[%s3091_s16 + $0x38] sm:$0xff]  ;;  %v461_v13 = vld [vmem:[%s3091_s16 + $0x40] sm:$0xff]  ;;  %2353 = vmatprep.subr.bf16.mxu1 %v2583_v21  ;;  %s2898_s26 = smov [#allocation8]  }
  0x5b   : > { %2317 = vmatprep.mubr.msk.bf16.mxu0 %vm556_vm0, %v485_v4  ;;  %v462_v14 = vld [vmem:[%s3091_s16 + $0x48] sm:$0xff]  ;;  %v488_v16 = vpack.c.bf16 %v460_v12, %v459_v11  ;;  %v463_v19 = vld [vmem:[%s3091_s16 + $0x50] sm:$0xff]  ;;  %v464_v20 = vld [vmem:[%s3091_s16 + $0x58] sm:$0xff]  ;;  %s2793_s24 = sshll.u32 %s2898_s26, 4  ;;  %s2794_s24 = int_to_ptr.vmem [resolvable:$false] %s2793_s24 }
  0x5c   : > { %2318 = vmatmul.mubr.msk.bf16.vlgmr.msra.gmra.mrb[0].mxu0 %vm556_vm0, %v486_v9  ;;  %v489_v18 = vpack.c.bf16 %v462_v14, %v461_v13  ;;  %v465_v22 = vld [vmem:[%s3091_s16 + $0x60] sm:$0xff]  ;;  %v466_v23 = vld [vmem:[%s3091_s16 + $0x68] sm:$0xff]  ;;  %v490_v25 = vpack.c.bf16 %v464_v20, %v463_v19  ;;  %v467_v28 = vld [vmem:[%s3091_s16 + $0x70] sm:$0xff]  ;;  %p2796_p4 = scmp.lt.s32.totalorder %s3610_s13, %s2794_s24 }
  0x5d   : > { %2321 = vmatprep.mubr.msk.bf16.mxu0 %vm556_vm0, %v487_v10  ;;  %v491_v26 = vpack.c.bf16 %v466_v23, %v465_v22  ;;  %2354 = vmatpush3.bf16.msra.mxu1 %v2583_v21  ;;  %v468_v29 = vld [vmem:[%s3091_s16 + $0x78] sm:$0xff]  ;;  %v469_v30 = vld [vmem:[%s3091_s16 + $0x80] sm:$0xff]  ;;  %v470_v31 = vld [vmem:[%s3091_s16 + $0x88] sm:$0xff] }
  0x5e   : > { %2355 = vmatprep.subr.bf16.mxu1 %v2584_v24  ;;  %v492_v33 = vpack.c.bf16 %v468_v29, %v467_v28  ;;  %v493_v34 = vpack.c.bf16 %v470_v31, %v469_v30  ;;  %v471_v35 = vld [vmem:[%s3091_s16 + $0x90] sm:$0xff]  ;;  %v472_v36 = vld [vmem:[%s3091_s16 + $0x98] sm:$0xff]  ;;  %v473_v37 = vld [vmem:[%s3091_s16 + $0xa0] sm:$0xff] }
  0x5f   : > { %v474_v38 = vld [vmem:[%s3091_s16 + $0xa8] sm:$0xff]  ;;  %v494_v39 = vpack.c.bf16 %v472_v36, %v471_v35  ;;  %v475_v41 = vld [vmem:[%s3091_s16 + $0xb0] sm:$0xff]  ;;  %v476_v42 = vld [vmem:[%s3091_s16 + $0xb8] sm:$0xff] }
  0x60   : > { %v495_v40 = vpack.c.bf16 %v474_v38, %v473_v37  ;;  %v477_v43 = vld [vmem:[%s3091_s16 + $0xc0] sm:$0xff]  ;;  %v478_v44 = vld [vmem:[%s3091_s16 + $0xc8] sm:$0xff]  ;;  %v496_v45 = vpack.c.bf16 %v476_v42, %v475_v41  ;;  %v479_v47 = vld [vmem:[%s3091_s16 + $0xd0] sm:$0xff] }
  0x61   : > { %2356 = vmatpush3.bf16.msra.mxu1 %v2584_v24  ;;  %v497_v46 = vpack.c.bf16 %v478_v44, %v477_v43  ;;  %v480_v48 = vld [vmem:[%s3091_s16 + $0xd8] sm:$0xff]  ;;  %v481_v49 = vld [vmem:[%s3091_s16 + $0xe0] sm:$0xff]  ;;  %v482_v50 = vld [vmem:[%s3091_s16 + $0xe8] sm:$0xff] }
  0x62   : > { %2357 = vmatprep.subr.bf16.mxu1 %v2585_v27  ;;  %v498_v51 = vpack.c.bf16 %v480_v48, %v479_v47  ;;  %v499_v52 = vpack.c.bf16 %v482_v50, %v481_v49  ;;  %v483_v53 = vld [vmem:[%s3091_s16 + $0xf0] sm:$0xff]  ;;  %v484_v54 = vld [vmem:[%s3091_s16 + $0xf8] sm:$0xff] }
  0x63   : > { %v500_v55 = vpack.c.bf16 %v484_v54, %v483_v53 }
  0x64   : > { %2322 = vmatmul.mubr.msk.bf16.gmra.mrb[4].mxu0 %vm556_vm0, %v488_v16 }
  0x65   : > { %2325 = vmatprep.mubr.msk.bf16.mxu0 %vm556_vm0, %v489_v18  ;;  %2358 = vmatpush3.bf16.msra.mxu1 %v2585_v27 }
  0x66   : > { %2359 = vmatprep.subr.bf16.mxu1 %v2586_v32 }
  0x69   : > { %2360 = vmatpush3.bf16.msra.mxu1 %v2586_v32 }
  0x6a   : > { %2361 = vmatprep.subr.bf16.mxu1 %v2587_v56 }
  0x6c   : > { %2326 = vmatmul.mubr.msk.bf16.gmra.mrb[8].mxu0 %vm556_vm0, %v490_v25 }
  0x6d   : > { %2329 = vmatprep.mubr.msk.bf16.mxu0 %vm556_vm0, %v491_v26  ;;  %2362 = vmatpush3.bf16.msra.mxu1 %v2587_v56 }
  0x6e   : > { %2363 = vmatprep.subr.bf16.mxu1 %v2588_v57 }
  0x71   : > { %2364 = vmatpush3.bf16.msra.mxu1 %v2588_v57 }
  0x74   : > { %2330 = vmatmul.mubr.msk.bf16.gmra.mrb[12].mxu0 %vm556_vm0, %v492_v33 }
  0x75   : > { %2333 = vmatprep.mubr.msk.bf16.mxu0 %vm556_vm0, %v493_v34 }
  0x7c   : > { %2334 = vmatmul.mubr.msk.bf16.gmra.mrb[16].mxu0 %vm556_vm0, %v494_v39 }
  0x7d   : > { %2337 = vmatprep.mubr.msk.bf16.mxu0 %vm556_vm0, %v495_v40 }
  0x84   : > { %2338 = vmatmul.mubr.msk.bf16.gmra.mrb[20].mxu0 %vm556_vm0, %v496_v45 }
  0x85   : > { %2341 = vmatprep.mubr.msk.bf16.mxu0 %vm556_vm0, %v497_v46 }
  0x8c   : > { %2342 = vmatmul.mubr.msk.bf16.gmra.mrb[24].mxu0 %vm556_vm0, %v498_v51 }
  0x8d   : > { %2345 = vmatprep.mubr.msk.bf16.mxu0 %vm556_vm0, %v499_v52 }
  0x94   : > { %2346 = vmatmul.mubr.msk.bf16.gmra.mrb[28].mxu0 %vm556_vm0, %v500_v55 }
 0x12f   : > { %v2319_v59 = vpop.f32.mrb[0].mxu0 }
 0x130   : > { %v648_v60 = vadd.f32 %v2319_v59, %v3168_v58  ;;  %v639_v61 = vpop.f32.mrb[1].mxu0 }
 0x131   : > { %v640_v62 = vadd.f32 %v3168_v58, %v639_v61  ;;  %v2320_v63 = vpop.f32.mrb[2].mxu0 }
 0x132   : > { %v651_v0 = vadd.f32 %v2320_v63, %v3168_v58  ;;  %v642_v1 = vpop.f32.mrb[3].mxu0  ;;  %v768_v3 = vmax.f32 %v648_v60, 0.0 }
 0x133   : > { %v643_v2 = vadd.f32 %v3168_v58, %v642_v1  ;;  %v766_v5 = vmax.f32 %v640_v62, 0.0 }
 0x134   : > { %v769_v4 = vmax.f32 %v651_v0, 0.0 }
 0x135   : > { %v767_v6 = vmax.f32 %v643_v2, 0.0 }
 0x136   : > { %v799_v7 = vpack.c.bf16 %v769_v4, %v768_v3 }
 0x137   : > { %v2323_v8 = vpop.f32.mrb[4].mxu0  ;;  %v798_v9 = vpack.c.bf16 %v767_v6, %v766_v5 }
 0x138   : > { %v664_v10 = vadd.f32 %v2323_v8, %v3168_v58  ;;  %v655_v11 = vpop.f32.mrb[5].mxu0 }
 0x139   : > { %v656_v12 = vadd.f32 %v3168_v58, %v655_v11  ;;  %v2324_v13 = vpop.f32.mrb[6].mxu0  ;;  %2365 = vmatprep.mubr.bf16.mxu1 %v798_v9 }
 0x13a   : > { %v667_v14 = vadd.f32 %v2324_v13, %v3168_v58  ;;  %v658_v15 = vpop.f32.mrb[7].mxu0  ;;  %2366 = vmatmul.mubr.bf16.vlgmr.msra.gmra.mrb[0].mxu1 %v799_v7  ;;  %v772_v17 = vmax.f32 %v664_v10, 0.0 }
 0x13b   : > { %v659_v16 = vadd.f32 %v3168_v58, %v658_v15  ;;  %v770_v19 = vmax.f32 %v656_v12, 0.0 }
 0x13c   : > { %v773_v18 = vmax.f32 %v667_v14, 0.0 }
 0x13d   : > { %v771_v20 = vmax.f32 %v659_v16, 0.0 }
 0x13e   : > { %v801_v21 = vpack.c.bf16 %v773_v18, %v772_v17 }
 0x13f   : > { %v800_v22 = vpack.c.bf16 %v771_v20, %v770_v19  ;;  %v2327_v23 = vpop.f32.mrb[8].mxu0 }
 0x140   : > { %v680_v24 = vadd.f32 %v2327_v23, %v3168_v58  ;;  %v671_v25 = vpop.f32.mrb[9].mxu0 }
 0x141   : > { %v672_v26 = vadd.f32 %v3168_v58, %v671_v25  ;;  %v2328_v27 = vpop.f32.mrb[10].mxu0  ;;  %2369 = vmatprep.mubr.bf16.mxu1 %v800_v22 }
 0x142   : > { %v683_v28 = vadd.f32 %v2328_v27, %v3168_v58  ;;  %v674_v29 = vpop.f32.mrb[11].mxu0  ;;  %2370 = vmatmul.mubr.bf16.gmra.mrb[4].mxu1 %v801_v21  ;;  %v776_v31 = vmax.f32 %v680_v24, 0.0 }
 0x143   : > { %v675_v30 = vadd.f32 %v3168_v58, %v674_v29  ;;  %v774_v33 = vmax.f32 %v672_v26, 0.0 }
 0x144   : > { %v777_v32 = vmax.f32 %v683_v28, 0.0 }
 0x145   : > { %v775_v34 = vmax.f32 %v675_v30, 0.0 }
 0x146   : > { %v803_v35 = vpack.c.bf16 %v777_v32, %v776_v31 }
 0x147   : > { %v802_v36 = vpack.c.bf16 %v775_v34, %v774_v33  ;;  %v2331_v37 = vpop.f32.mrb[12].mxu0 }
 0x148   : > { %v696_v38 = vadd.f32 %v2331_v37, %v3168_v58  ;;  %v687_v39 = vpop.f32.mrb[13].mxu0 }
 0x149   : > { %v688_v40 = vadd.f32 %v3168_v58, %v687_v39  ;;  %v2332_v41 = vpop.f32.mrb[14].mxu0  ;;  %2373 = vmatprep.mubr.bf16.mxu1 %v802_v36 }
 0x14a   : > { %v699_v42 = vadd.f32 %v2332_v41, %v3168_v58  ;;  %v690_v43 = vpop.f32.mrb[15].mxu0  ;;  %2374 = vmatmul.mubr.bf16.gmra.mrb[8].mxu1 %v803_v35  ;;  %v780_v45 = vmax.f32 %v696_v38, 0.0 }
 0x14b   : > { %v691_v44 = vadd.f32 %v3168_v58, %v690_v43  ;;  %v778_v47 = vmax.f32 %v688_v40, 0.0 }
 0x14c   : > { %v781_v46 = vmax.f32 %v699_v42, 0.0 }
 0x14d   : > { %v779_v48 = vmax.f32 %v691_v44, 0.0  ;;  %v2589_v44 = vld [vmem:[%s3772_s6] sm:$0xff]  }
 0x14e   : > { %v805_v49 = vpack.c.bf16 %v781_v46, %v780_v45  ;;  %2397 = vmatprep.subr.bf16.mxu0 %v2589_v44  ;;  %v2590_v45 = vld [vmem:[%s3772_s6 + $0x8] sm:$0xff]   ;;  %v2592_v46 = vld [vmem:[%s3772_s6 + $0x18] sm:$0xff]  }
 0x14f   : > { %v804_v50 = vpack.c.bf16 %v779_v48, %v778_v47  ;;  %v2335_v51 = vpop.f32.mrb[16].mxu0  ;;  %2398 = vmatpush3.bf16.msra.mxu0 %v2589_v44  ;;  %v2593_v47 = vld [vmem:[%s3772_s6 + $0x20] sm:$0xff]   ;;  %v2594_v48 = vld [vmem:[%s3772_s6 + $0x28] sm:$0xff]  }
 0x150   : > { %v712_v52 = vadd.f32 %v2335_v51, %v3168_v58  ;;  %v703_v53 = vpop.f32.mrb[17].mxu0  ;;  %2399 = vmatprep.subr.bf16.mxu0 %v2590_v45  ;;  %v3233_v51 = vld [vmem:[%s3771_s5] ss:$0 sm:$0xff] }
 0x151   : > { %v704_v54 = vadd.f32 %v3168_v58, %v703_v53  ;;  %v2336_v55 = vpop.f32.mrb[18].mxu0  ;;  %2377 = vmatprep.mubr.bf16.mxu1 %v804_v50  ;;  %v2596_v50 = vld [vmem:[%s3772_s6 + $0x38] sm:$0xff]  }
 0x152   : > { %v715_v56 = vadd.f32 %v2336_v55, %v3168_v58  ;;  %v706_v57 = vpop.f32.mrb[19].mxu0  ;;  %2378 = vmatmul.mubr.bf16.gmra.mrb[12].mxu1 %v805_v49  ;;  %v784_v60 = vmax.f32 %v712_v52, 0.0  ;;  %v2595_v49 = vld [vmem:[%s3772_s6 + $0x30] sm:$0xff]  }
 0x153   : > { %v707_v59 = vadd.f32 %v3168_v58, %v706_v57  ;;  %v782_v62 = vmax.f32 %v704_v54, 0.0  ;;  %2400 = vmatpush3.bf16.msra.mxu0 %v2590_v45 }
 0x154   : > { %v785_v61 = vmax.f32 %v715_v56, 0.0 }
 0x155   : > { %v783_v63 = vmax.f32 %v707_v59, 0.0 }
 0x156   : > { %v807_v0 = vpack.c.bf16 %v785_v61, %v784_v60 }
 0x157   : > { %v806_v1 = vpack.c.bf16 %v783_v63, %v782_v62  ;;  %v2339_v2 = vpop.f32.mrb[20].mxu0 }
 0x158   : > { %v728_v3 = vadd.f32 %v2339_v2, %v3168_v58  ;;  %v719_v4 = vpop.f32.mrb[21].mxu0 }
 0x159   : > { %v720_v5 = vadd.f32 %v3168_v58, %v719_v4  ;;  %v2340_v6 = vpop.f32.mrb[22].mxu0  ;;  %2381 = vmatprep.mubr.bf16.mxu1 %v806_v1 }
 0x15a   : > { %v731_v7 = vadd.f32 %v2340_v6, %v3168_v58  ;;  %v722_v8 = vpop.f32.mrb[23].mxu0  ;;  %2382 = vmatmul.mubr.bf16.gmra.mrb[16].mxu1 %v807_v0  ;;  %v788_v10 = vmax.f32 %v728_v3, 0.0 }
 0x15b   : > { %v723_v9 = vadd.f32 %v3168_v58, %v722_v8  ;;  %v786_v12 = vmax.f32 %v720_v5, 0.0 }
 0x15c   : > { %v789_v11 = vmax.f32 %v731_v7, 0.0 }
 0x15d   : > { %v787_v13 = vmax.f32 %v723_v9, 0.0 }
 0x15e   : > { %v809_v14 = vpack.c.bf16 %v789_v11, %v788_v10 }
 0x15f   : > { %v808_v15 = vpack.c.bf16 %v787_v13, %v786_v12  ;;  %v2343_v16 = vpop.f32.mrb[24].mxu0 }
 0x160   : > { %v744_v17 = vadd.f32 %v2343_v16, %v3168_v58  ;;  %v735_v18 = vpop.f32.mrb[25].mxu0 }
 0x161   : > { %v736_v19 = vadd.f32 %v3168_v58, %v735_v18  ;;  %v2344_v20 = vpop.f32.mrb[26].mxu0  ;;  %2385 = vmatprep.mubr.bf16.mxu1 %v808_v15 }
 0x162   : > { %v747_v21 = vadd.f32 %v2344_v20, %v3168_v58  ;;  %v738_v22 = vpop.f32.mrb[27].mxu0  ;;  %2386 = vmatmul.mubr.bf16.gmra.mrb[20].mxu1 %v809_v14  ;;  %v792_v24 = vmax.f32 %v744_v17, 0.0 }
 0x163   : > { %v739_v23 = vadd.f32 %v3168_v58, %v738_v22  ;;  %v790_v26 = vmax.f32 %v736_v19, 0.0 }
 0x164   : > { %v793_v25 = vmax.f32 %v747_v21, 0.0 }
 0x165   : > { %v791_v27 = vmax.f32 %v739_v23, 0.0 }
 0x166   : > { %v811_v28 = vpack.c.bf16 %v793_v25, %v792_v24 }
 0x167   : > { %v810_v29 = vpack.c.bf16 %v791_v27, %v790_v26  ;;  %v2347_v30 = vpop.f32.mrb[28].mxu0 }
 0x168   : > { %v760_v31 = vadd.f32 %v2347_v30, %v3168_v58  ;;  %v751_v32 = vpop.f32.mrb[29].mxu0 }
 0x169   : > { %v752_v33 = vadd.f32 %v3168_v58, %v751_v32  ;;  %v2348_v34 = vpop.f32.mrb[30].mxu0  ;;  %2389 = vmatprep.mubr.bf16.mxu1 %v810_v29 }
 0x16a   : > { %v763_v35 = vadd.f32 %v2348_v34, %v3168_v58  ;;  %v754_v36 = vpop.f32.mrb[31].mxu0  ;;  %2390 = vmatmul.mubr.bf16.gmra.mrb[24].mxu1 %v811_v28  ;;  %v796_v38 = vmax.f32 %v760_v31, 0.0 }
 0x16b   : > { %v755_v37 = vadd.f32 %v3168_v58, %v754_v36  ;;  %v794_v40 = vmax.f32 %v752_v33, 0.0  ;;  %v2591_v58 = vld [vmem:[%s3772_s6 + $0x10] sm:$0xff]  }
 0x16c   : > { %v797_v39 = vmax.f32 %v763_v35, 0.0  ;;  %2401 = vmatprep.subr.bf16.mxu0 %v2591_v58 }
 0x16d   : > { %v795_v41 = vmax.f32 %v755_v37, 0.0  ;;  %2402 = vmatpush3.bf16.msra.mxu0 %v2591_v58 }
 0x16e   : > { %v813_v42 = vpack.c.bf16 %v797_v39, %v796_v38  ;;  %2403 = vmatprep.subr.bf16.mxu0 %v2592_v46 }
 0x16f   : > { %v812_v43 = vpack.c.bf16 %v795_v41, %v794_v40 }
 0x171   : > { %2393 = vmatprep.mubr.bf16.mxu1 %v812_v43  ;;  %2404 = vmatpush3.bf16.msra.mxu0 %v2592_v46 }
 0x172   : > { %2394 = vmatmul.mubr.bf16.gmra.mrb[28].mxu1 %v813_v42  ;;  %2405 = vmatprep.subr.bf16.mxu0 %v2593_v47 }
 0x175   : > { %2406 = vmatpush3.bf16.msra.mxu0 %v2593_v47 }
 0x176   : > { %2407 = vmatprep.subr.bf16.mxu0 %v2594_v48 }
 0x179   : > { %2408 = vmatpush3.bf16.msra.mxu0 %v2594_v48 }
 0x17a   : > { %2409 = vmatprep.subr.bf16.mxu0 %v2595_v49 }
 0x17d   : > { %2410 = vmatpush3.bf16.msra.mxu0 %v2595_v49 }
 0x17e   : > { %2411 = vmatprep.subr.bf16.mxu0 %v2596_v50 }
 0x181   : > { %2412 = vmatpush3.bf16.msra.mxu0 %v2596_v50 }
 0x20d   : > { %v2367_v52 = vpop.f32.mrb[0].mxu1 }
 0x20e   : > { %v3236_v53 = vadd.f32 %v2367_v52, %v3233_v51  ;;  %v919_v54 = vpop.f32.mrb[1].mxu1  ;;  %v2597_v52 = vld [vmem:[#allocation5] sm:$0xff]  }
 0x20f   : > { %v3239_v55 = vadd.f32 %v3233_v51, %v919_v54  ;;  %v2368_v56 = vpop.f32.mrb[2].mxu1  ;;  %2493 = vmatprep.subr.bf16.mxu1 %v2597_v52  ;;  %2445 = vmatprep.subr.bf16.mxu0 %v2597_v52 }
 0x210   : > { %1928 = vst [vmem:[%s3243_s22 + $0x10] sm:$0xff] %v3236_v53  ;;  %v3248_v57 = vadd.f32 %v2368_v56, %v3233_v51  ;;  %1050 = vrot.lane.b32.xlu1 %v3236_v53, %s2897_s19  ;;  %v922_v59 = vpop.f32.mrb[3].mxu1  ;;  %v3455_v56 = vld [vmem:[#allocation5 + $0x8] sm:$0xff]   ;;  %2501 = vmatpush3.bf16.msra.mxu1 %v2597_v52 }
 0x211   : > { %1926 = vst [vmem:[%s3243_s22] sm:$0xff] %v3239_v55  ;;  %v3255_v60 = vadd.f32 %v3233_v51, %v922_v59  ;;  %1046 = vrot.lane.b32.xlu0 %v3239_v55, %s2897_s19  ;;  %2494 = vmatprep.subr.bf16.mxu1 %v3455_v56  ;;  %v3470_v59 = vld [vmem:[#allocation5 + $0x18] sm:$0xff]  }
 0x212   : > { %1929 = vst [vmem:[%s3243_s22 + $0x18] sm:$0xff] %v3248_v57 }
 0x213   : > { %1927 = vst [vmem:[%s3243_s22 + $0x8] sm:$0xff] %v3255_v60 }
 0x214   : > { %1052 = vrot.lane.b32.xlu1 %v3248_v57, %s2897_s19  ;;  %2502 = vmatpush3.bf16.msra.mxu1 %v3455_v56 }
 0x215   : > { %v2371_v61 = vpop.f32.mrb[4].mxu1  ;;  %1048 = vrot.lane.b32.xlu0 %v3255_v60, %s2897_s19 }
 0x216   : > { %v3268_v62 = vadd.f32 %v2371_v61, %v3233_v51  ;;  %v935_v63 = vpop.f32.mrb[5].mxu1  ;;  %v3474_v61 = vld [vmem:[#allocation5 + $0x20] sm:$0xff]  }
 0x217   : > { %v3271_v0 = vadd.f32 %v3233_v51, %v935_v63  ;;  %v2372_v1 = vpop.f32.mrb[6].mxu1  ;;  %v3478_v63 = vld [vmem:[#allocation5 + $0x28] sm:$0xff]  }
 0x218   : > { %1932 = vst [vmem:[%s3243_s22 + $0x30] sm:$0xff] %v3268_v62  ;;  %v3276_v2 = vadd.f32 %v2372_v1, %v3233_v51  ;;  %v938_v3 = vpop.f32.mrb[7].mxu1 }
 0x219   : > { %1930 = vst [vmem:[%s3243_s22 + $0x20] sm:$0xff] %v3271_v0  ;;  %v3281_v4 = vadd.f32 %v3233_v51, %v938_v3  ;;  %1054 = vrot.lane.b32.xlu0 %v3271_v0, %s2897_s19  ;;  %v501_v3 = vld [vmem:[%s3488_s25] sm:$0xff] }
 0x21a   : > { %1933 = vst [vmem:[%s3243_s22 + $0x38] sm:$0xff] %v3276_v2 }
 0x21b   : > { %1931 = vst [vmem:[%s3243_s22 + $0x28] sm:$0xff] %v3281_v4  ;;  %1056 = vrot.lane.b32.xlu1 %v3281_v4, %s2897_s19 }
 0x21d   : > { %v2375_v5 = vpop.f32.mrb[8].mxu1  ;;  %1058 = vrot.lane.b32.xlu0 %v3268_v62, %s2897_s19 }
 0x21e   : > { %v3294_v6 = vadd.f32 %v2375_v5, %v3233_v51  ;;  %v951_v7 = vpop.f32.mrb[9].mxu1 }
 0x21f   : > { %v3297_v8 = vadd.f32 %v3233_v51, %v951_v7  ;;  %v2376_v9 = vpop.f32.mrb[10].mxu1  ;;  %1060 = vrot.lane.b32.xlu1 %v3276_v2, %s2897_s19  ;;  %v503_v7 = vld [vmem:[%s3488_s25 + $0x10] sm:$0xff] }
 0x220   : > { %1936 = vst [vmem:[%s3243_s22 + $0x50] sm:$0xff] %v3294_v6  ;;  %v3304_v10 = vadd.f32 %v2376_v9, %v3233_v51  ;;  %v954_v11 = vpop.f32.mrb[11].mxu1  ;;  %v504_v9 = vld [vmem:[%s3488_s25 + $0x18] sm:$0xff] }
 0x221   : > { %1934 = vst [vmem:[%s3243_s22 + $0x40] sm:$0xff] %v3297_v8  ;;  %v3309_v12 = vadd.f32 %v3233_v51, %v954_v11  ;;  %1062 = vrot.lane.b32.xlu0 %v3297_v8, %s2897_s19  ;;  %v502_v11 = vld [vmem:[%s3488_s25 + $0x8] sm:$0xff] }
 0x222   : > { %1937 = vst [vmem:[%s3243_s22 + $0x58] sm:$0xff] %v3304_v10 }
 0x223   : > { %1935 = vst [vmem:[%s3243_s22 + $0x48] sm:$0xff] %v3309_v12  ;;  %1064 = vrot.lane.b32.xlu1 %v3309_v12, %s2897_s19 }
 0x225   : > { %v2379_v13 = vpop.f32.mrb[12].mxu1  ;;  %1066 = vrot.lane.b32.xlu0 %v3294_v6, %s2897_s19 }
 0x226   : > { %v3322_v14 = vadd.f32 %v2379_v13, %v3233_v51  ;;  %v967_v15 = vpop.f32.mrb[13].mxu1 }
 0x227   : > { %v3325_v16 = vadd.f32 %v3233_v51, %v967_v15  ;;  %v2380_v17 = vpop.f32.mrb[14].mxu1  ;;  %1068 = vrot.lane.b32.xlu1 %v3304_v10, %s2897_s19 }
 0x228   : > { %1940 = vst [vmem:[%s3243_s22 + $0x70] sm:$0xff] %v3322_v14  ;;  %v3332_v18 = vadd.f32 %v2380_v17, %v3233_v51  ;;  %v970_v19 = vpop.f32.mrb[15].mxu1 }
 0x229   : > { %1938 = vst [vmem:[%s3243_s22 + $0x60] sm:$0xff] %v3325_v16  ;;  %v3337_v20 = vadd.f32 %v3233_v51, %v970_v19  ;;  %1070 = vrot.lane.b32.xlu0 %v3325_v16, %s2897_s19 }
 0x22a   : > { %1941 = vst [vmem:[%s3243_s22 + $0x78] sm:$0xff] %v3332_v18 }
 0x22b   : > { %1939 = vst [vmem:[%s3243_s22 + $0x68] sm:$0xff] %v3337_v20  ;;  %1072 = vrot.lane.b32.xlu1 %v3337_v20, %s2897_s19 }
 0x22d   : > { %v2383_v21 = vpop.f32.mrb[16].mxu1  ;;  %1074 = vrot.lane.b32.xlu0 %v3322_v14, %s2897_s19 }
 0x22e   : > { %v3350_v22 = vadd.f32 %v2383_v21, %v3233_v51  ;;  %v983_v23 = vpop.f32.mrb[17].mxu1 }
 0x22f   : > { %v3353_v24 = vadd.f32 %v3233_v51, %v983_v23  ;;  %v2384_v25 = vpop.f32.mrb[18].mxu1  ;;  %1076 = vrot.lane.b32.xlu1 %v3332_v18, %s2897_s19 }
 0x230   : > { %1944 = vst [vmem:[%s3243_s22 + $0x90] sm:$0xff] %v3350_v22  ;;  %v3360_v26 = vadd.f32 %v2384_v25, %v3233_v51  ;;  %v986_v27 = vpop.f32.mrb[19].mxu1 }
 0x231   : > { %1942 = vst [vmem:[%s3243_s22 + $0x80] sm:$0xff] %v3353_v24  ;;  %v3365_v28 = vadd.f32 %v3233_v51, %v986_v27  ;;  %1078 = vrot.lane.b32.xlu0 %v3353_v24, %s2897_s19  ;;  %v505_v27 = vld [vmem:[%s3488_s25 + $0x20] sm:$0xff] }
 0x232   : > { %1945 = vst [vmem:[%s3243_s22 + $0x98] sm:$0xff] %v3360_v26 }
 0x233   : > { %1943 = vst [vmem:[%s3243_s22 + $0x88] sm:$0xff] %v3365_v28  ;;  %1080 = vrot.lane.b32.xlu1 %v3365_v28, %s2897_s19 }
 0x235   : > { %v2387_v29 = vpop.f32.mrb[20].mxu1  ;;  %1082 = vrot.lane.b32.xlu0 %v3350_v22, %s2897_s19 }
 0x236   : > { %v3378_v30 = vadd.f32 %v2387_v29, %v3233_v51  ;;  %v999_v31 = vpop.f32.mrb[21].mxu1 }
 0x237   : > { %v3381_v32 = vadd.f32 %v3233_v51, %v999_v31  ;;  %v2388_v33 = vpop.f32.mrb[22].mxu1  ;;  %1084 = vrot.lane.b32.xlu1 %v3360_v26, %s2897_s19 }
 0x238   : > { %1948 = vst [vmem:[%s3243_s22 + $0xb0] sm:$0xff] %v3378_v30  ;;  %v3388_v34 = vadd.f32 %v2388_v33, %v3233_v51  ;;  %v1002_v35 = vpop.f32.mrb[23].mxu1 }
 0x239   : > { %1946 = vst [vmem:[%s3243_s22 + $0xa0] sm:$0xff] %v3381_v32  ;;  %v3393_v36 = vadd.f32 %v3233_v51, %v1002_v35  ;;  %1086 = vrot.lane.b32.xlu0 %v3381_v32, %s2897_s19 }
 0x23a   : > { %1949 = vst [vmem:[%s3243_s22 + $0xb8] sm:$0xff] %v3388_v34 }
 0x23b   : > { %1947 = vst [vmem:[%s3243_s22 + $0xa8] sm:$0xff] %v3393_v36  ;;  %1088 = vrot.lane.b32.xlu1 %v3393_v36, %s2897_s19 }
 0x23d   : > { %v2391_v37 = vpop.f32.mrb[24].mxu1  ;;  %1090 = vrot.lane.b32.xlu0 %v3378_v30, %s2897_s19 }
 0x23e   : > { %v3406_v38 = vadd.f32 %v2391_v37, %v3233_v51  ;;  %v1015_v39 = vpop.f32.mrb[25].mxu1  ;;  %v506_v37 = vld [vmem:[%s3488_s25 + $0x28] sm:$0xff] }
 0x23f   : > { %v3409_v40 = vadd.f32 %v3233_v51, %v1015_v39  ;;  %v2392_v41 = vpop.f32.mrb[26].mxu1  ;;  %1092 = vrot.lane.b32.xlu1 %v3388_v34, %s2897_s19 }
 0x240   : > { %1952 = vst [vmem:[%s3243_s22 + $0xd0] sm:$0xff] %v3406_v38  ;;  %v3416_v42 = vadd.f32 %v2392_v41, %v3233_v51  ;;  %v1018_v43 = vpop.f32.mrb[27].mxu1 }
 0x241   : > { %1950 = vst [vmem:[%s3243_s22 + $0xc0] sm:$0xff] %v3409_v40  ;;  %v3421_v44 = vadd.f32 %v3233_v51, %v1018_v43  ;;  %1094 = vrot.lane.b32.xlu0 %v3409_v40, %s2897_s19 }
 0x242   : > { %1953 = vst [vmem:[%s3243_s22 + $0xd8] sm:$0xff] %v3416_v42 }
 0x243   : > { %1951 = vst [vmem:[%s3243_s22 + $0xc8] sm:$0xff] %v3421_v44  ;;  %1096 = vrot.lane.b32.xlu1 %v3421_v44, %s2897_s19 }
 0x245   : > { %v2395_v45 = vpop.f32.mrb[28].mxu1  ;;  %1098 = vrot.lane.b32.xlu0 %v3406_v38, %s2897_s19 }
 0x246   : > { %v3434_v58 = vadd.f32 %v2395_v45, %v3233_v51  ;;  %v1031_v46 = vpop.f32.mrb[29].mxu1 }
 0x247   : > { %v3437_v47 = vadd.f32 %v3233_v51, %v1031_v46  ;;  %v2396_v48 = vpop.f32.mrb[30].mxu1  ;;  %1100 = vrot.lane.b32.xlu1 %v3416_v42, %s2897_s19  ;;  %v507_v46 = vld [vmem:[%s3488_s25 + $0x30] sm:$0xff] }
 0x248   : > { %1956 = vst [vmem:[%s3243_s22 + $0xf0] sm:$0xff] %v3434_v58  ;;  %v3444_v49 = vadd.f32 %v2396_v48, %v3233_v51  ;;  %v1034_v50 = vpop.f32.mrb[31].mxu1 }
 0x249   : > { %1954 = vst [vmem:[%s3243_s22 + $0xe0] sm:$0xff] %v3437_v47  ;;  %v3449_v54 = vadd.f32 %v3233_v51, %v1034_v50  ;;  %1102 = vrot.lane.b32.xlu0 %v3437_v47, %s2897_s19  ;;  %v3464_v51 = vld [vmem:[#allocation5 + $0x10] sm:$0xff]   ;;  %v508_v50 = vld [vmem:[%s3488_s25 + $0x38] sm:$0xff] }
 0x24a   : > { %1957 = vst [vmem:[%s3243_s22 + $0xf8] sm:$0xff] %v3444_v49  ;;  %2495 = vmatprep.subr.bf16.mxu1 %v3464_v51 }
 0x24b   : > { %1955 = vst [vmem:[%s3243_s22 + $0xe8] sm:$0xff] %v3449_v54  ;;  %1104 = vrot.lane.b32.xlu1 %v3449_v54, %s2897_s19  ;;  %2503 = vmatpush3.bf16.msra.mxu1 %v3464_v51 }
 0x24c   : > { %2496 = vmatprep.subr.bf16.mxu1 %v3470_v59 }
 0x24d   : > { %1106 = vrot.lane.b32.xlu0 %v3434_v58, %s2897_s19 }
 0x24f   : > { %1108 = vrot.lane.b32.xlu1 %v3444_v49, %s2897_s19  ;;  %2504 = vmatpush3.bf16.msra.mxu1 %v3470_v59  ;;  %s2789_s19 = scalar_lea.vmem %s3610_s13, 4096 }
 0x250   : > { %2497 = vmatprep.subr.bf16.mxu1 %v3474_v61  ;;  %p2790_p12 = scmp.ne.s32.totalorder %s3610_s13, %s2789_s19 }
 0x252   : > { %p2791_p2 = pnand %p2790_p12, %p3800_p1 }
 0x253   : > { %2505 = vmatpush3.bf16.msra.mxu1 %v3474_v61 }
 0x254   : > { %2498 = vmatprep.subr.bf16.mxu1 %v3478_v63  ;;  %p2792_p3 = pneg %p2791_p2 }
 0x257   : > { %2506 = vmatpush3.bf16.msra.mxu1 %v3478_v63 }
 0x282   : > { %v1051_v1 = vpop.permute.xlu1 %1050 }
 0x283   : > { %v1047_v5 = vpop.permute.xlu0 %1046  ;;  %v1112_v17 = vmul.f32 %v1051_v1, %v503_v7 }
 0x284   : > { %v1110_v13 = vmul.f32 %v1047_v5, %v501_v3  ;;  %v509_v3 = vld [vmem:[%s3488_s25 + $0x40] sm:$0xff] }
 0x285   : > { %v1144_v33 = vadd.f32 %v1112_v17, %v3236_v53 }
 0x286   : > { %v1053_v15 = vpop.permute.xlu1 %1052  ;;  %v1142_v29 = vadd.f32 %v1110_v13, %v3239_v55 }
 0x287   : > { %v1113_v19 = vmul.f32 %v1053_v15, %v504_v9  ;;  %v1049_v21 = vpop.permute.xlu0 %1048 }
 0x288   : > { %v1111_v23 = vmul.f32 %v1049_v21, %v502_v11  ;;  %v510_v11 = vld [vmem:[%s3488_s25 + $0x48] sm:$0xff] }
 0x289   : > { %v1145_v25 = vadd.f32 %v1113_v19, %v3248_v57 }
 0x28a   : > { %v1143_v31 = vadd.f32 %v1111_v23, %v3255_v60  ;;  %v512_v23 = vld [vmem:[%s3488_s25 + $0x58] sm:$0xff] }
 0x28b   : > { %v1055_v35 = vpop.permute.xlu0 %1054  ;;  %v1175_v43 = vpack.c.bf16 %v1145_v25, %v1144_v33 }
 0x28c   : > { %v1114_v39 = vmul.f32 %v1055_v35, %v505_v27  ;;  %v1174_v41 = vpack.c.bf16 %v1143_v31, %v1142_v29  ;;  %v513_v29 = vld [vmem:[%s3488_s25 + $0x60] sm:$0xff]  ;;  %v514_v35 = vld [vmem:[%s3488_s25 + $0x68] sm:$0xff] }
 0x28d   : > { %v1057_v45 = vpop.permute.xlu1 %1056 }
 0x28e   : > { %v1115_v48 = vmul.f32 %v1057_v45, %v506_v37  ;;  %2413 = vmatprep.mubr.bf16.mxu0 %v1174_v41  ;;  %v1146_v55 = vadd.f32 %v1114_v39, %v3271_v0  ;;  %v515_v41 = vld [vmem:[%s3488_s25 + $0x70] sm:$0xff] }
 0x28f   : > { %2414 = vmatmul.mubr.bf16.vlgmr.msra.gmra.mrb[32].mxu0 %v1175_v43  ;;  %v1059_v57 = vpop.permute.xlu0 %1058 }
 0x290   : > { %v1147_v60 = vadd.f32 %v1115_v48, %v3281_v4  ;;  %v1116_v53 = vmul.f32 %v1059_v57, %v507_v46  ;;  %2446 = vmatpush3.bf16.msra.mxu0 %v2597_v52  ;;  %v511_v52 = vld [vmem:[%s3488_s25 + $0x50] sm:$0xff]  ;;  %v516_v46 = vld [vmem:[%s3488_s25 + $0x78] sm:$0xff] }
 0x291   : > { %v1061_v1 = vpop.permute.xlu1 %1060  ;;  %2447 = vmatprep.subr.bf16.mxu0 %v3455_v56 }
 0x292   : > { %v1117_v5 = vmul.f32 %v1061_v1, %v508_v50  ;;  %v1176_v7 = vpack.c.bf16 %v1147_v60, %v1146_v55  ;;  %v1148_v13 = vadd.f32 %v1116_v53, %v3268_v62  ;;  %v517_v50 = vld [vmem:[%s3488_s25 + $0x80] sm:$0xff]  ;;  %v518_v53 = vld [vmem:[%s3488_s25 + $0x88] sm:$0xff] }
 0x293   : > { %v1063_v9 = vpop.permute.xlu0 %1062 }
 0x294   : > { %v1149_v15 = vadd.f32 %v1117_v5, %v3276_v2  ;;  %v1118_v0 = vmul.f32 %v1063_v9, %v509_v3  ;;  %2417 = vmatprep.mubr.bf16.mxu0 %v1176_v7  ;;  %2448 = vmatpush3.bf16.msra.mxu0 %v3455_v56  ;;  %v519_v5 = vld [vmem:[%s3488_s25 + $0x90] sm:$0xff] }
 0x295   : > { %v1065_v4 = vpop.permute.xlu1 %1064  ;;  %2449 = vmatprep.subr.bf16.mxu0 %v3464_v51 }
 0x296   : > { %v1119_v17 = vmul.f32 %v1065_v4, %v510_v11  ;;  %v1177_v19 = vpack.c.bf16 %v1149_v15, %v1148_v13  ;;  %v1150_v25 = vadd.f32 %v1118_v0, %v3297_v8  ;;  %v520_v11 = vld [vmem:[%s3488_s25 + $0x98] sm:$0xff]  ;;  %v521_v0 = vld [vmem:[%s3488_s25 + $0xa0] sm:$0xff] }
 0x297   : > { %v1067_v21 = vpop.permute.xlu0 %1066 }
 0x298   : > { %v1151_v62 = vadd.f32 %v1119_v17, %v3309_v12  ;;  %v1120_v2 = vmul.f32 %v1067_v21, %v511_v52  ;;  %2418 = vmatmul.mubr.bf16.gmra.mrb[36].mxu0 %v1177_v19  ;;  %v522_v19 = vld [vmem:[%s3488_s25 + $0xa8] sm:$0xff] }
 0x299   : > { %v1069_v27 = vpop.permute.xlu1 %1068  ;;  %2450 = vmatpush3.bf16.msra.mxu0 %v3464_v51 }
 0x29a   : > { %v1121_v56 = vmul.f32 %v1069_v27, %v512_v23  ;;  %v1178_v31 = vpack.c.bf16 %v1151_v62, %v1150_v25  ;;  %2451 = vmatprep.subr.bf16.mxu0 %v3470_v59  ;;  %v1152_v37 = vadd.f32 %v1120_v2, %v3294_v6  ;;  %v523_v25 = vld [vmem:[%s3488_s25 + $0xb0] sm:$0xff]  ;;  %v524_v27 = vld [vmem:[%s3488_s25 + $0xb8] sm:$0xff] }
 0x29b   : > { %v1071_v33 = vpop.permute.xlu0 %1070 }
 0x29c   : > { %v1153_v8 = vadd.f32 %v1121_v56, %v3304_v10  ;;  %v1122_v12 = vmul.f32 %v1071_v33, %v513_v29  ;;  %2421 = vmatprep.mubr.bf16.mxu0 %v1178_v31  ;;  %v525_v33 = vld [vmem:[%s3488_s25 + $0xc0] sm:$0xff] }
 0x29d   : > { %v1073_v39 = vpop.permute.xlu1 %1072  ;;  %2452 = vmatpush3.bf16.msra.mxu0 %v3470_v59 }
 0x29e   : > { %v1123_v43 = vmul.f32 %v1073_v39, %v514_v35  ;;  %v1179_v51 = vpack.c.bf16 %v1153_v8, %v1152_v37  ;;  %2453 = vmatprep.subr.bf16.mxu0 %v3474_v61  ;;  %v1154_v48 = vadd.f32 %v1122_v12, %v3325_v16  ;;  %v526_v8 = vld [vmem:[%s3488_s25 + $0xc8] sm:$0xff] }
 0x29f   : > { %v1075_v45 = vpop.permute.xlu0 %1074 }
 0x2a0   : > { %v1155_v6 = vadd.f32 %v1123_v43, %v3337_v20  ;;  %v1124_v10 = vmul.f32 %v1075_v45, %v515_v41  ;;  %2422 = vmatmul.mubr.bf16.gmra.mrb[40].mxu0 %v1179_v51  ;;  %v527_v43 = vld [vmem:[%s3488_s25 + $0xd0] sm:$0xff] }
 0x2a1   : > { %v1077_v57 = vpop.permute.xlu1 %1076  ;;  %2454 = vmatpush3.bf16.msra.mxu0 %v3474_v61 }
 0x2a2   : > { %v1125_v59 = vmul.f32 %v1077_v57, %v516_v46  ;;  %v1180_v55 = vpack.c.bf16 %v1155_v6, %v1154_v48  ;;  %2455 = vmatprep.subr.bf16.mxu0 %v3478_v63  ;;  %v1156_v1 = vadd.f32 %v1124_v10, %v3322_v14  ;;  %v528_v46 = vld [vmem:[%s3488_s25 + $0xd8] sm:$0xff]  ;;  %v529_v57 = vld [vmem:[%s3488_s25 + $0xe0] sm:$0xff] }
 0x2a3   : > { %v1079_v60 = vpop.permute.xlu0 %1078 }
 0x2a4   : > { %v1157_v16 = vadd.f32 %v1125_v59, %v3332_v18  ;;  %v1126_v20 = vmul.f32 %v1079_v60, %v517_v50  ;;  %2425 = vmatprep.mubr.bf16.mxu0 %v1180_v55  ;;  %v530_v55 = vld [vmem:[%s3488_s25 + $0xe8] sm:$0xff] }
 0x2a5   : > { %v1081_v3 = vpop.permute.xlu1 %1080  ;;  %2456 = vmatpush3.bf16.msra.mxu0 %v3478_v63 }
 0x2a6   : > { %v1127_v61 = vmul.f32 %v1081_v3, %v518_v53  ;;  %v1181_v7 = vpack.c.bf16 %v1157_v16, %v1156_v1  ;;  %v1158_v13 = vadd.f32 %v1126_v20, %v3353_v24  ;;  %v531_v20 = vld [vmem:[%s3488_s25 + $0xf0] sm:$0xff] }
 0x2a7   : > { %v1083_v9 = vpop.permute.xlu0 %1082 }
 0x2a8   : > { %v1159_v15 = vadd.f32 %v1127_v61, %v3365_v28  ;;  %v1128_v14 = vmul.f32 %v1083_v9, %v519_v5  ;;  %2426 = vmatmul.mubr.bf16.gmra.mrb[44].mxu0 %v1181_v7  ;;  %v532_v5 = vld [vmem:[%s3488_s25 + $0xf8] sm:$0xff]  ;;  %s2795_s25 = scalar_lea.vmem %s2794_s24, 8192 }
 0x2a9   : > { %v1085_v18 = vpop.permute.xlu1 %1084  ;;  %p2797_p7 = scmp.lt.s32.totalorder %s2795_s25, %s2789_s19 }
 0x2aa   : > { %v1129_v4 = vmul.f32 %v1085_v18, %v520_v11  ;;  %v1182_v52 = vpack.c.bf16 %v1159_v15, %v1158_v13  ;;  %v1160_v63 = vadd.f32 %v1128_v14, %v3350_v22  ;;  %v2603_v18 = vld [vmem:[#allocation5 + $0x30] sm:$0xff]  }
 0x2ab   : > { %v1087_v17 = vpop.permute.xlu0 %1086  ;;  %2457 = vmatprep.subr.bf16.mxu0 %v2603_v18  ;;  %2499 = vmatprep.subr.bf16.mxu1 %v2603_v18  ;;  %p2798_p8 = por %p2797_p7, %p2796_p4 }
 0x2ac   : > { %v1161_v21 = vadd.f32 %v1129_v4, %v3360_v26  ;;  %v1130_v23 = vmul.f32 %v1087_v17, %v521_v0  ;;  %2429 = vmatprep.mubr.bf16.mxu0 %v1182_v52  ;;  %2458 = vmatpush3.bf16.msra.mxu0 %v2603_v18 }
 0x2ad   : > { %v1089_v24 = vpop.permute.xlu1 %1088  ;;  %2507 = vmatpush3.bf16.msra.mxu1 %v2603_v18  ;;  %p2799_p11 = pnand %p2798_p8, %p2792_p3 }
 0x2ae   : > { %v1131_v28 = vmul.f32 %v1089_v24, %v522_v19  ;;  %v1183_v62 = vpack.c.bf16 %v1161_v21, %v1160_v63  ;;  %v1162_v29 = vadd.f32 %v1130_v23, %v3381_v32 }
 0x2af   : > { %v1091_v2 = vpop.permute.xlu0 %1090 }
 0x2b0   : > { %v1163_v56 = vadd.f32 %v1131_v28, %v3393_v36  ;;  %v1132_v31 = vmul.f32 %v1091_v2, %v523_v25  ;;  %2430 = vmatmul.mubr.bf16.gmra.mrb[48].mxu0 %v1183_v62 }
 0x2b1   : > { %v1093_v22 = vpop.permute.xlu1 %1092 }
 0x2b2   : > { %v1133_v26 = vmul.f32 %v1093_v22, %v524_v27  ;;  %v1184_v35 = vpack.c.bf16 %v1163_v56, %v1162_v29  ;;  %v1164_v12 = vadd.f32 %v1132_v31, %v3378_v30 }
 0x2b3   : > { %v1095_v37 = vpop.permute.xlu0 %1094 }
 0x2b4   : > { %v1165_v39 = vadd.f32 %v1133_v26, %v3388_v34  ;;  %v1134_v41 = vmul.f32 %v1095_v37, %v525_v33  ;;  %2433 = vmatprep.mubr.bf16.mxu0 %v1184_v35 }
 0x2b5   : > { %v1097_v32 = vpop.permute.xlu1 %1096 }
 0x2b6   : > { %v1135_v36 = vmul.f32 %v1097_v32, %v526_v8  ;;  %v1185_v51 = vpack.c.bf16 %v1165_v39, %v1164_v12  ;;  %v1166_v48 = vadd.f32 %v1134_v41, %v3409_v40 }
 0x2b7   : > { %v1099_v45 = vpop.permute.xlu0 %1098 }
 0x2b8   : > { %v1167_v6 = vadd.f32 %v1135_v36, %v3421_v44  ;;  %v1136_v10 = vmul.f32 %v1099_v45, %v527_v43  ;;  %2434 = vmatmul.mubr.bf16.gmra.mrb[52].mxu0 %v1185_v51 }
 0x2b9   : > { %v1101_v30 = vpop.permute.xlu1 %1100 }
 0x2ba   : > { %v1137_v34 = vmul.f32 %v1101_v30, %v528_v46  ;;  %v1186_v50 = vpack.c.bf16 %v1167_v6, %v1166_v48  ;;  %v1168_v60 = vadd.f32 %v1136_v10, %v3406_v38 }
 0x2bb   : > { %v1103_v59 = vpop.permute.xlu0 %1102 }
 0x2bc   : > { %v1169_v53 = vadd.f32 %v1137_v34, %v3416_v42  ;;  %v1138_v1 = vmul.f32 %v1103_v59, %v529_v57  ;;  %2437 = vmatprep.mubr.bf16.mxu0 %v1186_v50 }
 0x2bd   : > { %v1105_v16 = vpop.permute.xlu1 %1104 }
 0x2be   : > { %v1139_v40 = vmul.f32 %v1105_v16, %v530_v55  ;;  %v1187_v3 = vpack.c.bf16 %v1169_v53, %v1168_v60  ;;  %v1170_v61 = vadd.f32 %v1138_v1, %v3437_v47  ;;  %v2604_v47 = vld [vmem:[#allocation5 + $0x38] sm:$0xff]  }
 0x2bf   : > { %v1107_v44 = vpop.permute.xlu0 %1106  ;;  %2459 = vmatprep.subr.bf16.mxu0 %v2604_v47  ;;  %2500 = vmatprep.subr.bf16.mxu1 %v2604_v47 }
 0x2c0   : > { %v1171_v7 = vadd.f32 %v1139_v40, %v3449_v54  ;;  %v1140_v9 = vmul.f32 %v1107_v44, %v531_v20  ;;  %2438 = vmatmul.mubr.bf16.gmra.mrb[56].mxu0 %v1187_v3  ;;  %2508 = vmatpush3.bf16.msra.mxu1 %v2604_v47  ;;  %v3567_v54 = vld [vmem:[%s3773_s7] ss:$0 sm:$0xff] }
 0x2c1   : > { %v1109_v11 = vpop.permute.xlu1 %1108  ;;  %2460 = vmatpush3.bf16.msra.mxu0 %v2604_v47 }
 0x2c2   : > { %v1141_v13 = vmul.f32 %v1109_v11, %v532_v5  ;;  %v1188_v15 = vpack.c.bf16 %v1171_v7, %v1170_v61  ;;  %v1172_v38 = vadd.f32 %v1140_v9, %v3434_v58 }
 0x2c4   : > { %v1173_v42 = vadd.f32 %v1141_v13, %v3444_v49  ;;  %2441 = vmatprep.mubr.bf16.mxu0 %v1188_v15 }
 0x2c6   : > { %v1189_v14 = vpack.c.bf16 %v1173_v42, %v1172_v38 }
 0x2c8   : > { %2442 = vmatmul.mubr.bf16.gmra.mrb[60].mxu0 %v1189_v14 }
 0x362   : > { %v2415_v58 = vpop.f32.mrb[32].mxu0 }
 0x363   : > { %v1304_v49 = vadd.f32 %v2415_v58, %v3567_v54  ;;  %v1295_v0 = vpop.f32.mrb[33].mxu0 }
 0x364   : > { %v1296_v4 = vadd.f32 %v3567_v54, %v1295_v0  ;;  %v2416_v52 = vpop.f32.mrb[34].mxu0 }
 0x365   : > { %v1307_v17 = vadd.f32 %v2416_v52, %v3567_v54  ;;  %v1298_v19 = vpop.f32.mrb[35].mxu0  ;;  %v1424_v21 = vmax.f32 %v1304_v49, 0.0 }
 0x366   : > { %v1299_v63 = vadd.f32 %v3567_v54, %v1298_v19  ;;  %v1422_v24 = vmax.f32 %v1296_v4, 0.0 }
 0x367   : > { %v1425_v23 = vmax.f32 %v1307_v17, 0.0 }
 0x368   : > { %v1423_v25 = vmax.f32 %v1299_v63, 0.0 }
 0x369   : > { %v1455_v28 = vpack.c.bf16 %v1425_v23, %v1424_v21 }
 0x36a   : > { %v1454_v62 = vpack.c.bf16 %v1423_v25, %v1422_v24 }
 0x36b   : > { %v2419_v2 = vpop.f32.mrb[36].mxu0 }
 0x36c   : > { %v1320_v27 = vadd.f32 %v2419_v2, %v3567_v54  ;;  %v1311_v29 = vpop.f32.mrb[37].mxu0  ;;  %2461 = vmatprep.mubr.bf16.mxu0 %v1454_v62 }
 0x36d   : > { %v1312_v56 = vadd.f32 %v3567_v54, %v1311_v29  ;;  %v2420_v31 = vpop.f32.mrb[38].mxu0  ;;  %2462 = vmatmul.mubr.bf16.vlgmr.msra.gmra.mrb[64].mxu0 %v1455_v28 }
 0x36e   : > { %v1323_v22 = vadd.f32 %v2420_v31, %v3567_v54  ;;  %v1314_v33 = vpop.f32.mrb[39].mxu0  ;;  %v1428_v35 = vmax.f32 %v1320_v27, 0.0 }
 0x36f   : > { %v1315_v26 = vadd.f32 %v3567_v54, %v1314_v33  ;;  %v1426_v8 = vmax.f32 %v1312_v56, 0.0 }
 0x370   : > { %v1429_v37 = vmax.f32 %v1323_v22, 0.0 }
 0x371   : > { %v1427_v12 = vmax.f32 %v1315_v26, 0.0 }
 0x372   : > { %v1457_v39 = vpack.c.bf16 %v1429_v37, %v1428_v35 }
 0x373   : > { %v1456_v41 = vpack.c.bf16 %v1427_v12, %v1426_v8  ;;  %v2423_v32 = vpop.f32.mrb[40].mxu0 }
 0x374   : > { %v1336_v43 = vadd.f32 %v2423_v32, %v3567_v54  ;;  %v1327_v36 = vpop.f32.mrb[41].mxu0 }
 0x375   : > { %v1328_v51 = vadd.f32 %v3567_v54, %v1327_v36  ;;  %v2424_v45 = vpop.f32.mrb[42].mxu0  ;;  %2465 = vmatprep.mubr.bf16.mxu1 %v1456_v41 }
 0x376   : > { %v1339_v46 = vadd.f32 %v2424_v45, %v3567_v54  ;;  %v1330_v48 = vpop.f32.mrb[43].mxu0  ;;  %2466 = vmatmul.mubr.bf16.vlgmr.msra.gmra.mrb[32].mxu1 %v1457_v39  ;;  %v1432_v10 = vmax.f32 %v1336_v43, 0.0 }
 0x377   : > { %v1331_v6 = vadd.f32 %v3567_v54, %v1330_v48  ;;  %v1430_v57 = vmax.f32 %v1328_v51, 0.0 }
 0x378   : > { %v1433_v30 = vmax.f32 %v1339_v46, 0.0 }
 0x379   : > { %v1431_v34 = vmax.f32 %v1331_v6, 0.0 }
 0x37a   : > { %v1459_v50 = vpack.c.bf16 %v1433_v30, %v1432_v10 }
 0x37b   : > { %v1458_v59 = vpack.c.bf16 %v1431_v34, %v1430_v57  ;;  %v2427_v55 = vpop.f32.mrb[44].mxu0 }
 0x37c   : > { %v1352_v60 = vadd.f32 %v2427_v55, %v3567_v54  ;;  %v1343_v53 = vpop.f32.mrb[45].mxu0 }
 0x37d   : > { %v1344_v1 = vadd.f32 %v3567_v54, %v1343_v53  ;;  %v2428_v16 = vpop.f32.mrb[46].mxu0  ;;  %2469 = vmatprep.mubr.bf16.mxu1 %v1458_v59 }
 0x37e   : > { %v1355_v20 = vadd.f32 %v2428_v16, %v3567_v54  ;;  %v1346_v40 = vpop.f32.mrb[47].mxu0  ;;  %2470 = vmatmul.mubr.bf16.gmra.mrb[36].mxu1 %v1459_v50  ;;  %v1436_v44 = vmax.f32 %v1352_v60, 0.0 }
 0x37f   : > { %v1347_v3 = vadd.f32 %v3567_v54, %v1346_v40  ;;  %v1434_v61 = vmax.f32 %v1344_v1, 0.0 }
 0x380   : > { %v1437_v5 = vmax.f32 %v1355_v20, 0.0 }
 0x381   : > { %v1435_v7 = vmax.f32 %v1347_v3, 0.0 }
 0x382   : > { %v1461_v9 = vpack.c.bf16 %v1437_v5, %v1436_v44 }
 0x383   : > { %v1460_v11 = vpack.c.bf16 %v1435_v7, %v1434_v61  ;;  %v2431_v13 = vpop.f32.mrb[48].mxu0 }
 0x384   : > { %v1368_v15 = vadd.f32 %v2431_v13, %v3567_v54  ;;  %v1359_v38 = vpop.f32.mrb[49].mxu0 }
 0x385   : > { %v1360_v42 = vadd.f32 %v3567_v54, %v1359_v38  ;;  %v2432_v14 = vpop.f32.mrb[50].mxu0  ;;  %2473 = vmatprep.mubr.bf16.mxu1 %v1460_v11 }
 0x386   : > { %v1371_v18 = vadd.f32 %v2432_v14, %v3567_v54  ;;  %v1362_v47 = vpop.f32.mrb[51].mxu0  ;;  %2474 = vmatmul.mubr.bf16.gmra.mrb[40].mxu1 %v1461_v9  ;;  %v1440_v49 = vmax.f32 %v1368_v15, 0.0 }
 0x387   : > { %v1363_v58 = vadd.f32 %v3567_v54, %v1362_v47  ;;  %v1438_v4 = vmax.f32 %v1360_v42, 0.0 }
 0x388   : > { %v1441_v0 = vmax.f32 %v1371_v18, 0.0 }
 0x389   : > { %v1439_v52 = vmax.f32 %v1363_v58, 0.0 }
 0x38a   : > { %v1463_v17 = vpack.c.bf16 %v1441_v0, %v1440_v49 }
 0x38b   : > { %v1462_v19 = vpack.c.bf16 %v1439_v52, %v1438_v4  ;;  %v2435_v63 = vpop.f32.mrb[52].mxu0 }
 0x38c   : > { %v1384_v21 = vadd.f32 %v2435_v63, %v3567_v54  ;;  %v1375_v23 = vpop.f32.mrb[53].mxu0 }
 0x38d   : > { %v1376_v24 = vadd.f32 %v3567_v54, %v1375_v23  ;;  %v2436_v25 = vpop.f32.mrb[54].mxu0  ;;  %2477 = vmatprep.mubr.bf16.mxu1 %v1462_v19 }
 0x38e   : > { %v1387_v28 = vadd.f32 %v2436_v25, %v3567_v54  ;;  %v1378_v62 = vpop.f32.mrb[55].mxu0  ;;  %2478 = vmatmul.mubr.bf16.gmra.mrb[44].mxu1 %v1463_v17  ;;  %v1444_v27 = vmax.f32 %v1384_v21, 0.0 }
 0x38f   : > { %v1379_v2 = vadd.f32 %v3567_v54, %v1378_v62  ;;  %v1442_v56 = vmax.f32 %v1376_v24, 0.0 }
 0x390   : > { %v1445_v29 = vmax.f32 %v1387_v28, 0.0 }
 0x391   : > { %v1443_v31 = vmax.f32 %v1379_v2, 0.0 }
 0x392   : > { %v1465_v22 = vpack.c.bf16 %v1445_v29, %v1444_v27 }
 0x393   : > { %v1464_v33 = vpack.c.bf16 %v1443_v31, %v1442_v56  ;;  %v2439_v26 = vpop.f32.mrb[56].mxu0 }
 0x394   : > { %v1400_v35 = vadd.f32 %v2439_v26, %v3567_v54  ;;  %v1391_v37 = vpop.f32.mrb[57].mxu0 }
 0x395   : > { %v1392_v8 = vadd.f32 %v3567_v54, %v1391_v37  ;;  %v2440_v12 = vpop.f32.mrb[58].mxu0  ;;  %2481 = vmatprep.mubr.bf16.mxu1 %v1464_v33 }
 0x396   : > { %v1403_v39 = vadd.f32 %v2440_v12, %v3567_v54  ;;  %v1394_v41 = vpop.f32.mrb[59].mxu0  ;;  %2482 = vmatmul.mubr.bf16.gmra.mrb[48].mxu1 %v1465_v22  ;;  %v1448_v43 = vmax.f32 %v1400_v35, 0.0 }
 0x397   : > { %v1395_v32 = vadd.f32 %v3567_v54, %v1394_v41  ;;  %v1446_v51 = vmax.f32 %v1392_v8, 0.0 }
 0x398   : > { %v1449_v36 = vmax.f32 %v1403_v39, 0.0 }
 0x399   : > { %v1447_v45 = vmax.f32 %v1395_v32, 0.0 }
 0x39a   : > { %v1467_v46 = vpack.c.bf16 %v1449_v36, %v1448_v43 }
 0x39b   : > { %v1466_v48 = vpack.c.bf16 %v1447_v45, %v1446_v51  ;;  %v2443_v6 = vpop.f32.mrb[60].mxu0 }
 0x39c   : > { %v1416_v10 = vadd.f32 %v2443_v6, %v3567_v54  ;;  %v1407_v30 = vpop.f32.mrb[61].mxu0 }
 0x39d   : > { %v1408_v57 = vadd.f32 %v3567_v54, %v1407_v30  ;;  %v2444_v34 = vpop.f32.mrb[62].mxu0  ;;  %2485 = vmatprep.mubr.bf16.mxu1 %v1466_v48 }
 0x39e   : > { %v1419_v50 = vadd.f32 %v2444_v34, %v3567_v54  ;;  %v1410_v59 = vpop.f32.mrb[63].mxu0  ;;  %2486 = vmatmul.mubr.bf16.gmra.mrb[52].mxu1 %v1467_v46  ;;  %v1452_v60 = vmax.f32 %v1416_v10, 0.0 }
 0x39f   : > { %v1411_v55 = vadd.f32 %v3567_v54, %v1410_v59  ;;  %v1450_v1 = vmax.f32 %v1408_v57, 0.0 }
 0x3a0   : > { %v1453_v53 = vmax.f32 %v1419_v50, 0.0 }
 0x3a1   : > { %v1451_v16 = vmax.f32 %v1411_v55, 0.0 }
 0x3a2   : > { %v1469_v20 = vpack.c.bf16 %v1453_v53, %v1452_v60 }
 0x3a3   : > { %v1468_v40 = vpack.c.bf16 %v1451_v16, %v1450_v1 }
 0x3a5   : > { %2489 = vmatprep.mubr.bf16.mxu1 %v1468_v40 }
 0x3a6   : > { %2490 = vmatmul.mubr.bf16.gmra.mrb[56].mxu1 %v1469_v20 }
 0x3a7   : > { %2802 = shalt.err (!%p2799_p11)
}
 0x3a8   : > { %s2803_s22 = scalar_lea.hbm %s3607_s17, 4096  ;;  %s2807_s16 = scalar_lea.hbm %s3777_s11, 8192 }
 0x3a9   : > { %p2804_p13 = scmp.ne.s32.totalorder %s3607_s17, %s2803_s22  ;;  %p2808_p6 = scmp.lt.u32.totalorder %s3607_s17, %s3777_s11 }
 0x3aa   : > { %p2809_p9 = scmp.lt.u32.totalorder %s2807_s16, %s2803_s22  ;;  %p2811_p12 = scmp.lt.u32.totalorder %s2803_s22, %s3607_s17 }
 0x3ab   : > { %p2805_p5 = pnand %p2804_p13, %p3800_p1 }
 0x3ac   : > { %p2810_p10 = por %p2809_p9, %p2808_p6 }
 0x3ad   : > { %p2806_p0 = pneg %p2805_p5 }
 0x3ae   : > { %p2812_p2 = por %p2811_p12, %p2810_p10 }
 0x3b0   : > { %p2813_p3 = pnand %p2812_p2, %p2806_p0 }
 0x3b2   : > { %2816 = shalt.err (!%p2813_p3)
}
 0x3b3   : > { %s2899_s19 = smov 128   ;;  %s2900_s24 = smov 8   ;;  %v3642_v54 = vld [vmem:[%s3775_s9] ss:$0 sm:$0xff] }
 0x3b4   : > { %2518 = dma.vmem_to_hbm [thread:$0]  (%p3800_p1), %s3610_s13, 4096, %s3607_s17, %s1964_s15, %s2899_s19, %s2899_s19, %s2900_s24  }
 0x3b5   : > { %s3661_s17 = scalar_lea.vmem [#allocation7], %s2129_s23  ;;  %s3716_s22 = scalar_lea.hbm %s3776_s10, %s2221_s30 }
 0x3b6   : > { %s1977_s23 = sshll.u32 %s3661_s17, 4  ;;  %s1959_s29 = scalar_lea.sflag [#allocation4], %s3224_s14  ;;  %s3718_s23 = int_to_ptr.vmem [resolvable:$true] %s1977_s23 }
 0x3b7   : > { %s2817_s16 = scalar_lea.vmem %s3718_s23, 4096  ;;  %s2901_s21 = smov [#allocation7]  }
 0x3b8   : > { %p2818_p4 = scmp.ne.s32.totalorder %s3718_s23, %s2817_s16  ;;  %s2821_s12 = sshll.u32 %s2901_s21, 4  ;;  %s2822_s12 = int_to_ptr.vmem [resolvable:$false] %s2821_s12 }
 0x3b9   : > { %s2823_s26 = scalar_lea.vmem %s2822_s12, 8192  ;;  %p2824_p11 = scmp.lt.s32.totalorder %s3718_s23, %s2822_s12 }
 0x3ba   : > { %p2819_p7 = pnand %p2818_p4, %p3800_p1  ;;  %p2825_p13 = scmp.lt.s32.totalorder %s2823_s26, %s2817_s16 }
 0x3bc   : > { %p2820_p8 = pneg %p2819_p7  ;;  %p2826_p5 = por %p2825_p13, %p2824_p11 }
 0x3be   : > { %p2827_p0 = pnand %p2826_p5, %p2820_p8 }
 0x440   : > { %v2463_v3 = vpop.f32.mrb[64].mxu0 }
 0x441   : > { %v1584_v44 = vadd.f32 %v2463_v3, %v3642_v54  ;;  %v1575_v5 = vpop.f32.mrb[65].mxu0 }
 0x442   : > { %v1576_v61 = vadd.f32 %v3642_v54, %v1575_v5  ;;  %v2464_v7 = vpop.f32.mrb[66].mxu0 }
 0x443   : > { %v2183_v9 = vmul.f32 -1.442695, %v1584_v44  ;;  %v1587_v11 = vadd.f32 %v2464_v7, %v3642_v54  ;;  %v1578_v13 = vpop.f32.mrb[67].mxu0 }
 0x444   : > { %v2181_v15 = vmul.f32 -1.442695, %v1576_v61  ;;  %v1579_v38 = vadd.f32 %v3642_v54, %v1578_v13 }
 0x445   : > { %2605 = vpow2.f32 %v2183_v9  ;;  %v2184_v42 = vmul.f32 -1.442695, %v1587_v11 }
 0x446   : > { %2607 = vpow2.f32 %v2181_v15  ;;  %v2182_v14 = vmul.f32 -1.442695, %v1579_v38 }
 0x447   : > { %2609 = vpow2.f32 %v2184_v42 }
 0x448   : > { %2611 = vpow2.f32 %v2182_v14 }
 0x449   : > { %v2467_v18 = vpop.f32.mrb[32].mxu1 }
 0x44a   : > { %v1600_v47 = vadd.f32 %v2467_v18, %v3642_v54  ;;  %v1591_v58 = vpop.f32.mrb[33].mxu1 }
 0x44b   : > { %v1592_v49 = vadd.f32 %v3642_v54, %v1591_v58  ;;  %v2468_v0 = vpop.f32.mrb[34].mxu1 }
 0x44c   : > { %v2187_v4 = vmul.f32 -1.442695, %v1600_v47  ;;  %v1603_v52 = vadd.f32 %v2468_v0, %v3642_v54  ;;  %v1594_v17 = vpop.f32.mrb[35].mxu1 }
 0x44d   : > { %v2185_v19 = vmul.f32 -1.442695, %v1592_v49  ;;  %v1595_v63 = vadd.f32 %v3642_v54, %v1594_v17 }
 0x44e   : > { %2613 = vpow2.f32 %v2187_v4  ;;  %v2188_v21 = vmul.f32 -1.442695, %v1603_v52 }
 0x44f   : > { %v2606_v23 = vpop.eup %2605  ;;  %2615 = vpow2.f32 %v2185_v19  ;;  %v2186_v24 = vmul.f32 -1.442695, %v1595_v63 }
 0x450   : > { %v2608_v25 = vpop.eup %2607  ;;  %v1800_v28 = vadd.f32 1.0, %v2606_v23  ;;  %2617 = vpow2.f32 %v2188_v21 }
 0x451   : > { %v2610_v62 = vpop.eup %2609  ;;  %v1798_v2 = vadd.f32 1.0, %v2608_v25  ;;  %2619 = vpow2.f32 %v2186_v24  ;;  %v2471_v27 = vpop.f32.mrb[36].mxu1 }
 0x452   : > { %v2612_v29 = vpop.eup %2611  ;;  %2621 = vrcp.f32 %v1800_v28  ;;  %v1801_v56 = vadd.f32 1.0, %v2610_v62  ;;  %v1616_v31 = vadd.f32 %v2471_v27, %v3642_v54  ;;  %v1607_v22 = vpop.f32.mrb[37].mxu1 }
 0x453   : > { %2623 = vrcp.f32 %v1798_v2  ;;  %v1799_v33 = vadd.f32 1.0, %v2612_v29  ;;  %v1608_v26 = vadd.f32 %v3642_v54, %v1607_v22  ;;  %v2472_v35 = vpop.f32.mrb[38].mxu1 }
 0x454   : > { %2625 = vrcp.f32 %v1801_v56  ;;  %v2191_v37 = vmul.f32 -1.442695, %v1616_v31  ;;  %v1619_v8 = vadd.f32 %v2472_v35, %v3642_v54  ;;  %v1610_v12 = vpop.f32.mrb[39].mxu1 }
 0x455   : > { %2627 = vrcp.f32 %v1799_v33  ;;  %v2189_v39 = vmul.f32 -1.442695, %v1608_v26  ;;  %v1611_v41 = vadd.f32 %v3642_v54, %v1610_v12 }
 0x456   : > { %2629 = vpow2.f32 %v2191_v37  ;;  %v2192_v32 = vmul.f32 -1.442695, %v1619_v8 }
 0x457   : > { %2631 = vpow2.f32 %v2189_v39  ;;  %v2190_v43 = vmul.f32 -1.442695, %v1611_v41 }
 0x458   : > { %v2614_v36 = vpop.eup %2613  ;;  %2633 = vpow2.f32 %v2192_v32 }
 0x459   : > { %v2616_v51 = vpop.eup %2615  ;;  %v1804_v45 = vadd.f32 1.0, %v2614_v36  ;;  %2635 = vpow2.f32 %v2190_v43  ;;  %v2475_v46 = vpop.f32.mrb[40].mxu1 }
 0x45a   : > { %v2618_v48 = vpop.eup %2617  ;;  %v1802_v6 = vadd.f32 1.0, %v2616_v51  ;;  %v1632_v10 = vadd.f32 %v2475_v46, %v3642_v54  ;;  %v1623_v30 = vpop.f32.mrb[41].mxu1 }
 0x45b   : > { %v2620_v57 = vpop.eup %2619  ;;  %2637 = vrcp.f32 %v1804_v45  ;;  %v1805_v34 = vadd.f32 1.0, %v2618_v48  ;;  %v1624_v50 = vadd.f32 %v3642_v54, %v1623_v30  ;;  %v2476_v59 = vpop.f32.mrb[42].mxu1 }
 0x45c   : > { %v2622_v55 = vpop.eup %2621  ;;  %2639 = vrcp.f32 %v1802_v6  ;;  %v1803_v60 = vadd.f32 1.0, %v2620_v57  ;;  %v2195_v53 = vmul.f32 -1.442695, %v1632_v10  ;;  %v1635_v1 = vadd.f32 %v2476_v59, %v3642_v54  ;;  %v1626_v16 = vpop.f32.mrb[43].mxu1 }
 0x45d   : > { %v2624_v20 = vpop.eup %2623  ;;  %1896 = vst [vmem:[%s3661_s17 + $0x10] sm:$0xff] %v2622_v55  ;;  %2641 = vrcp.f32 %v1805_v34  ;;  %v2193_v40 = vmul.f32 -1.442695, %v1624_v50  ;;  %v1627_v3 = vadd.f32 %v3642_v54, %v1626_v16 }
 0x45e   : > { %v2626_v44 = vpop.eup %2625  ;;  %1894 = vst [vmem:[%s3661_s17] sm:$0xff] %v2624_v20  ;;  %2643 = vrcp.f32 %v1803_v60  ;;  %v2196_v5 = vmul.f32 -1.442695, %v1635_v1 }
 0x45f   : > { %v2628_v61 = vpop.eup %2627  ;;  %1897 = vst [vmem:[%s3661_s17 + $0x18] sm:$0xff] %v2626_v44  ;;  %2645 = vpow2.f32 %v2195_v53  ;;  %v2194_v7 = vmul.f32 -1.442695, %v1627_v3 }
 0x460   : > { %v2630_v9 = vpop.eup %2629  ;;  %1895 = vst [vmem:[%s3661_s17 + $0x8] sm:$0xff] %v2628_v61  ;;  %2647 = vpow2.f32 %v2193_v40 }
 0x461   : > { %v2632_v11 = vpop.eup %2631  ;;  %v1808_v13 = vadd.f32 1.0, %v2630_v9  ;;  %2649 = vpow2.f32 %v2196_v5  ;;  %v2479_v15 = vpop.f32.mrb[44].mxu1 }
 0x462   : > { %v2634_v38 = vpop.eup %2633  ;;  %v1806_v42 = vadd.f32 1.0, %v2632_v11  ;;  %2651 = vpow2.f32 %v2194_v7  ;;  %v1648_v14 = vadd.f32 %v2479_v15, %v3642_v54  ;;  %v1639_v18 = vpop.f32.mrb[45].mxu1 }
 0x463   : > { %v2636_v47 = vpop.eup %2635  ;;  %2653 = vrcp.f32 %v1808_v13  ;;  %v1809_v58 = vadd.f32 1.0, %v2634_v38  ;;  %v1640_v49 = vadd.f32 %v3642_v54, %v1639_v18  ;;  %v2480_v0 = vpop.f32.mrb[46].mxu1 }
 0x464   : > { %2655 = vrcp.f32 %v1806_v42  ;;  %v1807_v4 = vadd.f32 1.0, %v2636_v47  ;;  %v2199_v52 = vmul.f32 -1.442695, %v1648_v14  ;;  %v1651_v17 = vadd.f32 %v2480_v0, %v3642_v54  ;;  %v1642_v19 = vpop.f32.mrb[47].mxu1 }
 0x465   : > { %v2638_v63 = vpop.eup %2637  ;;  %2657 = vrcp.f32 %v1809_v58  ;;  %v2197_v21 = vmul.f32 -1.442695, %v1640_v49  ;;  %v1643_v23 = vadd.f32 %v3642_v54, %v1642_v19 }
 0x466   : > { %v2640_v24 = vpop.eup %2639  ;;  %1900 = vst [vmem:[%s3661_s17 + $0x30] sm:$0xff] %v2638_v63  ;;  %2659 = vrcp.f32 %v1807_v4  ;;  %v2200_v25 = vmul.f32 -1.442695, %v1651_v17 }
 0x467   : > { %v2642_v28 = vpop.eup %2641  ;;  %1898 = vst [vmem:[%s3661_s17 + $0x20] sm:$0xff] %v2640_v24  ;;  %2661 = vpow2.f32 %v2199_v52  ;;  %v2198_v62 = vmul.f32 -1.442695, %v1643_v23 }
 0x468   : > { %v2644_v2 = vpop.eup %2643  ;;  %1901 = vst [vmem:[%s3661_s17 + $0x38] sm:$0xff] %v2642_v28  ;;  %2663 = vpow2.f32 %v2197_v21 }
 0x469   : > { %v2646_v27 = vpop.eup %2645  ;;  %1899 = vst [vmem:[%s3661_s17 + $0x28] sm:$0xff] %v2644_v2  ;;  %2665 = vpow2.f32 %v2200_v25  ;;  %v2483_v29 = vpop.f32.mrb[48].mxu1 }
 0x46a   : > { %v2648_v56 = vpop.eup %2647  ;;  %v1812_v31 = vadd.f32 1.0, %v2646_v27  ;;  %2667 = vpow2.f32 %v2198_v62  ;;  %v1664_v22 = vadd.f32 %v2483_v29, %v3642_v54  ;;  %v1655_v33 = vpop.f32.mrb[49].mxu1 }
 0x46b   : > { %v2650_v26 = vpop.eup %2649  ;;  %v1810_v35 = vadd.f32 1.0, %v2648_v56  ;;  %v1656_v37 = vadd.f32 %v3642_v54, %v1655_v33  ;;  %v2484_v8 = vpop.f32.mrb[50].mxu1 }
 0x46c   : > { %v2652_v12 = vpop.eup %2651  ;;  %2669 = vrcp.f32 %v1812_v31  ;;  %v1813_v39 = vadd.f32 1.0, %v2650_v26  ;;  %v2203_v41 = vmul.f32 -1.442695, %v1664_v22  ;;  %v1667_v32 = vadd.f32 %v2484_v8, %v3642_v54  ;;  %v1658_v43 = vpop.f32.mrb[51].mxu1 }
 0x46d   : > { %v2654_v36 = vpop.eup %2653  ;;  %2671 = vrcp.f32 %v1810_v35  ;;  %v1811_v51 = vadd.f32 1.0, %v2652_v12  ;;  %v2201_v45 = vmul.f32 -1.442695, %v1656_v37  ;;  %v1659_v46 = vadd.f32 %v3642_v54, %v1658_v43 }
 0x46e   : > { %v2656_v48 = vpop.eup %2655  ;;  %1904 = vst [vmem:[%s3661_s17 + $0x50] sm:$0xff] %v2654_v36  ;;  %2673 = vrcp.f32 %v1813_v39  ;;  %v2204_v6 = vmul.f32 -1.442695, %v1667_v32 }
 0x46f   : > { %v2658_v10 = vpop.eup %2657  ;;  %1902 = vst [vmem:[%s3661_s17 + $0x40] sm:$0xff] %v2656_v48  ;;  %2675 = vrcp.f32 %v1811_v51  ;;  %v2202_v30 = vmul.f32 -1.442695, %v1659_v46 }
 0x470   : > { %v2660_v57 = vpop.eup %2659  ;;  %1905 = vst [vmem:[%s3661_s17 + $0x58] sm:$0xff] %v2658_v10  ;;  %2677 = vpow2.f32 %v2203_v41 }
 0x471   : > { %v2662_v34 = vpop.eup %2661  ;;  %1903 = vst [vmem:[%s3661_s17 + $0x48] sm:$0xff] %v2660_v57  ;;  %2679 = vpow2.f32 %v2201_v45  ;;  %v2487_v50 = vpop.f32.mrb[52].mxu1 }
 0x472   : > { %v2664_v59 = vpop.eup %2663  ;;  %v1816_v55 = vadd.f32 1.0, %v2662_v34  ;;  %2681 = vpow2.f32 %v2204_v6  ;;  %v1680_v60 = vadd.f32 %v2487_v50, %v3642_v54  ;;  %v1671_v53 = vpop.f32.mrb[53].mxu1 }
 0x473   : > { %v2666_v1 = vpop.eup %2665  ;;  %v1814_v16 = vadd.f32 1.0, %v2664_v59  ;;  %2683 = vpow2.f32 %v2202_v30  ;;  %v1672_v20 = vadd.f32 %v3642_v54, %v1671_v53  ;;  %v2488_v40 = vpop.f32.mrb[54].mxu1 }
 0x474   : > { %v2668_v3 = vpop.eup %2667  ;;  %2685 = vrcp.f32 %v1816_v55  ;;  %v1817_v44 = vadd.f32 1.0, %v2666_v1  ;;  %v2207_v5 = vmul.f32 -1.442695, %v1680_v60  ;;  %v1683_v61 = vadd.f32 %v2488_v40, %v3642_v54  ;;  %v1674_v7 = vpop.f32.mrb[55].mxu1 }
 0x475   : > { %2687 = vrcp.f32 %v1814_v16  ;;  %v1815_v9 = vadd.f32 1.0, %v2668_v3  ;;  %v2205_v11 = vmul.f32 -1.442695, %v1672_v20  ;;  %v1675_v13 = vadd.f32 %v3642_v54, %v1674_v7 }
 0x476   : > { %v2670_v15 = vpop.eup %2669  ;;  %2689 = vrcp.f32 %v1817_v44  ;;  %v2208_v38 = vmul.f32 -1.442695, %v1683_v61 }
 0x477   : > { %v2672_v42 = vpop.eup %2671  ;;  %1908 = vst [vmem:[%s3661_s17 + $0x70] sm:$0xff] %v2670_v15  ;;  %2691 = vrcp.f32 %v1815_v9  ;;  %v2206_v14 = vmul.f32 -1.442695, %v1675_v13 }
 0x478   : > { %v2674_v18 = vpop.eup %2673  ;;  %1906 = vst [vmem:[%s3661_s17 + $0x60] sm:$0xff] %v2672_v42  ;;  %2693 = vpow2.f32 %v2207_v5 }
 0x479   : > { %v2676_v47 = vpop.eup %2675  ;;  %1909 = vst [vmem:[%s3661_s17 + $0x78] sm:$0xff] %v2674_v18  ;;  %2695 = vpow2.f32 %v2205_v11  ;;  %v2491_v58 = vpop.f32.mrb[56].mxu1 }
 0x47a   : > { %v2678_v49 = vpop.eup %2677  ;;  %1907 = vst [vmem:[%s3661_s17 + $0x68] sm:$0xff] %v2676_v47  ;;  %2697 = vpow2.f32 %v2208_v38  ;;  %v1696_v0 = vadd.f32 %v2491_v58, %v3642_v54  ;;  %v1687_v4 = vpop.f32.mrb[57].mxu1 }
 0x47b   : > { %v2680_v52 = vpop.eup %2679  ;;  %v1820_v17 = vadd.f32 1.0, %v2678_v49  ;;  %2699 = vpow2.f32 %v2206_v14  ;;  %v1688_v19 = vadd.f32 %v3642_v54, %v1687_v4  ;;  %v2492_v63 = vpop.f32.mrb[58].mxu1 }
 0x47c   : > { %v2682_v21 = vpop.eup %2681  ;;  %v1818_v23 = vadd.f32 1.0, %v2680_v52  ;;  %v1699_v24 = vadd.f32 %v2492_v63, %v3642_v54  ;;  %v1690_v25 = vpop.f32.mrb[59].mxu1  ;;  %v2211_v2 = vmul.f32 -1.442695, %v1696_v0 }
 0x47d   : > { %v2684_v28 = vpop.eup %2683  ;;  %2701 = vrcp.f32 %v1820_v17  ;;  %v1821_v62 = vadd.f32 1.0, %v2682_v21  ;;  %v1691_v27 = vadd.f32 %v3642_v54, %v1690_v25  ;;  %v2209_v31 = vmul.f32 -1.442695, %v1688_v19 }
 0x47e   : > { %v2686_v29 = vpop.eup %2685  ;;  %2703 = vrcp.f32 %v1818_v23  ;;  %v1819_v56 = vadd.f32 1.0, %v2684_v28  ;;  %v2212_v33 = vmul.f32 -1.442695, %v1699_v24 }
 0x47f   : > { %v2688_v22 = vpop.eup %2687  ;;  %1912 = vst [vmem:[%s3661_s17 + $0x90] sm:$0xff] %v2686_v29  ;;  %2705 = vrcp.f32 %v1821_v62  ;;  %v2210_v35 = vmul.f32 -1.442695, %v1691_v27 }
 0x480   : > { %v2690_v26 = vpop.eup %2689  ;;  %1910 = vst [vmem:[%s3661_s17 + $0x80] sm:$0xff] %v2688_v22  ;;  %2707 = vrcp.f32 %v1819_v56 }
 0x481   : > { %v2692_v37 = vpop.eup %2691  ;;  %1913 = vst [vmem:[%s3661_s17 + $0x98] sm:$0xff] %v2690_v26  ;;  %2709 = vpow2.f32 %v2211_v2 }
 0x482   : > { %v2694_v8 = vpop.eup %2693  ;;  %1911 = vst [vmem:[%s3661_s17 + $0x88] sm:$0xff] %v2692_v37  ;;  %2711 = vpow2.f32 %v2209_v31 }
 0x483   : > { %v2696_v54 = vpop.eup %2695  ;;  %v1824_v12 = vadd.f32 1.0, %v2694_v8  ;;  %2713 = vpow2.f32 %v2212_v33 }
 0x484   : > { %v2698_v39 = vpop.eup %2697  ;;  %v1822_v41 = vadd.f32 1.0, %v2696_v54  ;;  %2715 = vpow2.f32 %v2210_v35 }
 0x485   : > { %v2700_v32 = vpop.eup %2699  ;;  %2717 = vrcp.f32 %v1824_v12  ;;  %v1825_v43 = vadd.f32 1.0, %v2698_v39 }
 0x486   : > { %2719 = vrcp.f32 %v1822_v41  ;;  %v1823_v36 = vadd.f32 1.0, %v2700_v32 }
 0x487   : > { %v2702_v51 = vpop.eup %2701  ;;  %2721 = vrcp.f32 %v1825_v43 }
 0x488   : > { %v2704_v45 = vpop.eup %2703  ;;  %1916 = vst [vmem:[%s3661_s17 + $0xb0] sm:$0xff] %v2702_v51  ;;  %2723 = vrcp.f32 %v1823_v36 }
 0x489   : > { %v2706_v46 = vpop.eup %2705  ;;  %1914 = vst [vmem:[%s3661_s17 + $0xa0] sm:$0xff] %v2704_v45 }
 0x48a   : > { %v2708_v48 = vpop.eup %2707  ;;  %1917 = vst [vmem:[%s3661_s17 + $0xb8] sm:$0xff] %v2706_v46 }
 0x48b   : > { %v2710_v6 = vpop.eup %2709  ;;  %1915 = vst [vmem:[%s3661_s17 + $0xa8] sm:$0xff] %v2708_v48 }
 0x48c   : > { %v2712_v10 = vpop.eup %2711  ;;  %v1828_v30 = vadd.f32 1.0, %v2710_v6 }
 0x48d   : > { %v2714_v57 = vpop.eup %2713  ;;  %v1826_v34 = vadd.f32 1.0, %v2712_v10 }
 0x48e   : > { %v2716_v50 = vpop.eup %2715  ;;  %2725 = vrcp.f32 %v1828_v30  ;;  %v1829_v59 = vadd.f32 1.0, %v2714_v57 }
 0x48f   : > { %v2718_v55 = vpop.eup %2717  ;;  %2727 = vrcp.f32 %v1826_v34  ;;  %v1827_v60 = vadd.f32 1.0, %v2716_v50 }
 0x490   : > { %v2720_v53 = vpop.eup %2719  ;;  %1920 = vst [vmem:[%s3661_s17 + $0xd0] sm:$0xff] %v2718_v55  ;;  %2729 = vrcp.f32 %v1829_v59 }
 0x491   : > { %v2722_v1 = vpop.eup %2721  ;;  %1918 = vst [vmem:[%s3661_s17 + $0xc0] sm:$0xff] %v2720_v53  ;;  %2731 = vrcp.f32 %v1827_v60 }
 0x492   : > { %v2724_v16 = vpop.eup %2723  ;;  %1921 = vst [vmem:[%s3661_s17 + $0xd8] sm:$0xff] %v2722_v1 }
 0x493   : > { %1919 = vst [vmem:[%s3661_s17 + $0xc8] sm:$0xff] %v2724_v16 }
 0x498   : > { %v2726_v20 = vpop.eup %2725 }
 0x499   : > { %v2728_v40 = vpop.eup %2727  ;;  %1924 = vst [vmem:[%s3661_s17 + $0xf0] sm:$0xff] %v2726_v20 }
 0x49a   : > { %v2730_v3 = vpop.eup %2729  ;;  %1922 = vst [vmem:[%s3661_s17 + $0xe0] sm:$0xff] %v2728_v40 }
 0x49b   : > { %v2732_v44 = vpop.eup %2731  ;;  %1925 = vst [vmem:[%s3661_s17 + $0xf8] sm:$0xff] %v2730_v3 }
 0x49c   : > { %1923 = vst [vmem:[%s3661_s17 + $0xe8] sm:$0xff] %v2732_v44 }
 0x49d   : > { %2830 = shalt.err (!%p2827_p0)
}
 0x49e   : > { %s2831_s30 = scalar_lea.hbm %s3716_s22, 4096  ;;  %s2835_s17 = scalar_lea.hbm %s3776_s10, 8192 }
 0x49f   : > { %p2832_p6 = scmp.ne.s32.totalorder %s3716_s22, %s2831_s30  ;;  %p2836_p12 = scmp.lt.u32.totalorder %s3716_s22, %s3776_s10 }
 0x4a0   : > { %p2837_p2 = scmp.lt.u32.totalorder %s2835_s17, %s2831_s30  ;;  %p2839_p4 = scmp.lt.u32.totalorder %s2831_s30, %s3716_s22 }
 0x4a1   : > { %p2833_p9 = pnand %p2832_p6, %p3800_p1 }
 0x4a2   : > { %p2838_p3 = por %p2837_p2, %p2836_p12 }
 0x4a3   : > { %p2834_p10 = pneg %p2833_p9 }
 0x4a4   : > { %p2840_p7 = por %p2839_p4, %p2838_p3 }
 0x4a6   : > { %p2841_p8 = pnand %p2840_p7, %p2834_p10 }
 0x4a8   : > { %2844 = shalt.err (!%p2841_p8)
}
 0x4a9   : > { %2517 = dma.vmem_to_hbm [thread:$0]  (%p3800_p1), %s3718_s23, 4096, %s3716_s22, %s1959_s29, %s2899_s19, %s2899_s19, %s2900_s24  }
 0x4aa PF: > { %s3801_s16 = sld [smem:[#allocation14_spill]]  ;;  %s3802_s21 = sld [smem:[#allocation18_spill]] }
 0x4ab   : > { %p2539_p11 = scmp.ge.s32.totalorder %s2891_s20, 2 }
 0x4b0   : > { %s2008_s12 = sand.u32 1, %s3801_s16   ;;  %p3803_p13 = scmp.ne.s32.totalorder %s3802_s21, 0 }
 0x4b1   : > { %s2009_s26 = scalar_lea.sflag [#allocation4], %s2008_s12 }
 0x4b2   : > { %p2529_p5 = pnand %p2539_p11, %p3803_p13 }
 0x4b4   : > { %2870 = dma.done.wait (!%p2529_p5), %s2009_s26, 4096  }
 0x4b5   : > { %2872 = vsyncadd (!%p2529_p5), %s2009_s26, 4294963200  ;;  %s2018_s27 = scalar_lea.sflag [#allocation9], %s2008_s12 }
 0x4b6   : > { %2874 = dma.done.wait (!%p2529_p5), %s2018_s27, 4096  }
 0x4b7   : > { %2876 = vsyncadd (!%p2529_p5), %s2018_s27, 4294963200  ;;  %s3804_s20 = sld [smem:[#allocation16_spill]]  ;;  %s3805_s14 = sld [smem:[#allocation15_spill]] }
 0x4b8   : > { %s3806_s19 = sld [smem:[#allocation17_spill]]  ;;  %s3807_s17 = smov %s2883_s18 }
 0x4bd   : > { %p27_p1 = scmp.ge.s32.totalorder %s3804_s20, 4   ;;  %s3808_s18 = smov %s3805_s14 }
 0x4bf   :  { %29 = sbr.rel (!%p27_p1) target bundleno = 7 (0x7), region = 124 }
 0x4c6   :  { %2023 = vsyncpa [#allocation3], 1 }
 0x4c7   :  { %2025 = vsyncpa [#allocation3 + $0x1], 1 }
 0x4c8   :  { %2026 = vsyncpa [#allocation6], 1 }
 0x4c9   :  { %2027 = vsyncpa [#allocation4], 1 }
 0x4ca   :  { %2029 = vsyncpa [#allocation4 + $0x1], 1 }
 0x4cb   :  { %2030 = vsyncpa [#allocation9], 1 }
 0x4cc   :  { %2032 = vsyncpa [#allocation9 + $0x1], 1 }

</bundles_post_ra>
